<compile_context>
chip_gen: v7x
topology: tpu7x:2x2x1
jax: 0.10.0
libtpu: 0.0.40
codegen_flags: <defaults>
</compile_context>

<pallas_src>
import functools

import jax
import jax.numpy as jnp
import numpy as np
from jax import lax
from jax.experimental import pallas as pl
from jax.experimental.pallas import tpu as pltpu

_LANE = 128
_SUBLANE = 8


def _round_up(x, m):
    return (x + m - 1) // m * m


def _pick_row_tile(R):
    """Largest row tile <= 1024 dividing R (R is a multiple of 8 here)."""
    if R <= 1024:
        return R
    t = 1024
    while t >= 8:
        if R % t == 0:
            return t
        t -= 8
    return R  # unreachable when R % 8 == 0


def _tpu_flavor():
    """(wide_mxu, vmem_limit_bytes) based on the TPU generation."""
    try:
        kind = jax.devices()[0].device_kind.lower()
    except Exception:
        kind = ""
    is_v7 = "7" in kind
    wide_mxu = is_v7 or ("6" in kind)            # v6e / v7x: 2x256^2 MXUs
    vmem_limit = (40 if is_v7 else 100) * 1024 * 1024  # v7x has 64 MiB VMEM / TC
    return wide_mxu, vmem_limit


# ----------------------------------------------------------------------------
# Kernel A: dilated conv (no bias) for one (batch, Cout-tile, Cin-chunk) step,
# accumulated across the Cin-chunk ("arbitrary") axis, plus per-(batch, tile)
# (sum, sum-of-squares) channel statistics for BatchNorm at the last chunk.
# ----------------------------------------------------------------------------
def _conv_stats_kernel(xp_ref, w_ref, y_ref, stats_ref, acc_ref, *,
                       dilation, H, W, Wt, KH, KW, TCin):
    # xp_ref   : (1, Hp, Wp, TCin)       bf16 padded input (one batch, one Cin chunk)
    # w_ref    : (1, KH*KW*TCin, TCout)  bf16, per-tap [TCin, TCout] slabs stacked
    # y_ref    : (H*Wt, TCout)           bf16 conv output block (written at last k)
    # stats_ref: (1, 2, TCout)           f32 per-(n, co) stats  (written at last k)
    # acc_ref  : (H*Wt, TCout)           f32 accumulator, carried across the k axis
    k = pl.program_id(2)
    Hp = xp_ref.shape[1]
    rows = H * Wt

    for kw in range(KW):
        # One sublane-unaligned relayout per kw (KW copies instead of KH*KW).
        slab = xp_ref[0, :, kw * dilation: kw * dilation + Wt, :]
        slab2d = slab.reshape(Hp * Wt, TCin)      # Wt % 8 == 0 -> tile-aligned merge
        for kh in range(KH):
            start = kh * dilation * Wt            # multiple of 8 -> aligned row slice
            patch = slab2d[start:start + rows, :]
            tap = kh * KW + kw
            wk = w_ref[0, tap * TCin:(tap + 1) * TCin, :]
            contrib = jnp.dot(patch, wk, preferred_element_type=jnp.float32)
            if kh == 0 and kw == 0:
                # First tap: overwrite on the first Cin chunk (no zero-fill pass).
                @pl.when(k == 0)
                def _():
                    acc_ref[...] = contrib

                @pl.when(k > 0)
                def _():
                    acc_ref[...] += contrib
            else:
                acc_ref[...] += contrib

    @pl.when(k == pl.num_programs(2) - 1)
    def _():
        acc = acc_ref[...]
        y_ref[...] = acc.astype(y_ref.dtype)      # bf16, lane-dense store
        if Wt != W:
            # Exclude width-padding columns from the BN statistics.
            col = lax.broadcasted_iota(jnp.int32, (rows, 1), 0) % Wt
            acc = jnp.where(col < W, acc, 0.0)
        s0 = jnp.sum(acc, axis=0)                 # (TCout,)
        s1 = jnp.sum(acc * acc, axis=0)           # (TCout,)
        # TODO(synk): if profiling shows VALU-bound, compute s0 as ones-row @ acc
        # on the MXU instead of an axis-0 VPU reduction.
        stats_ref[0] = jnp.stack([s0, s1], axis=0)


# ----------------------------------------------------------------------------
# Kernel B: precomputed BN affine (scale/shift) + ReLU over lane-dense row tiles.
# ----------------------------------------------------------------------------
def _bn_relu_kernel(y_ref, scale_ref, shift_ref, o_ref):
    # y_ref: (TR, C) bf16; scale/shift: (1, C) f32
    y = y_ref[...].astype(jnp.float32)
    o_ref[...] = jnp.maximum(y * scale_ref[...] + shift_ref[...], 0.0).astype(o_ref.dtype)


# ----------------------------------------------------------------------------
# Wrapper: ASPP_module.forward
# ----------------------------------------------------------------------------
@functools.partial(jax.jit, static_argnums=(4, 5, 6, 7))
def _aspp_forward_jit(x_nchw, w_oihw, gamma, beta, dilation, eps, wide_mxu, vmem_limit):
    N, Cin, H, W = x_nchw.shape
    Cout, _, KH, KW = w_oihw.shape
    padding = 0 if KH == 1 else dilation

    Cin_p = _round_up(Cin, _LANE)
    Cout_p = _round_up(Cout, _LANE)

    # Cout tile: 256 fills the 2x256^2 MXUs on v6e/v7x; 128 on v5e and older.
    TCout = 256 if (wide_mxu and Cout_p % 256 == 0) else 128
    n_cout = Cout_p // TCout

    # Cin reduction chunk: bounds per-step input/weight blocks (v7x 64 MiB VMEM).
    if Cin_p <= 512:
        TCin = Cin_p
    elif Cin_p % 512 == 0:
        TCin = 512
    elif Cin_p % 256 == 0:
        TCin = 256
    else:
        TCin = 128
    n_cin = Cin_p // TCin

    # Pad the output width to a sublane multiple so row blocks / the in-kernel
    # H-W merge are tile-aligned for any W.
    Wt = _round_up(W, _SUBLANE)
    Hp = H + 2 * padding
    Wp = Wt + 2 * padding

    # Glue: NCHW -> padded NHWC bf16, channels padded to a lane multiple.
    x = jnp.transpose(x_nchw, (0, 2, 3, 1)).astype(jnp.bfloat16)
    xp = jnp.pad(x, ((0, 0), (padding, padding),
                     (padding, padding + (Wt - W)), (0, Cin_p - Cin)))

    # Glue: OIHW -> (n_cin, KH*KW*TCin, Cout_p) stacked per-tap slabs, bf16.
    w = jnp.transpose(w_oihw, (2, 3, 1, 0)).astype(jnp.bfloat16)   # (KH,KW,Cin,Cout)
    w = jnp.pad(w, ((0, 0), (0, 0), (0, Cin_p - Cin), (0, Cout_p - Cout)))
    w = w.reshape(KH, KW, n_cin, TCin, Cout_p)
    w = jnp.transpose(w, (2, 0, 1, 3, 4)).reshape(n_cin, KH * KW * TCin, Cout_p)

    R = N * H * Wt        # padded row count of the flattened conv output

    # --- Pass 1: dilated conv + per-(n, co) BN stats -------------------------
    conv_kernel = functools.partial(
        _conv_stats_kernel, dilation=dilation, H=H, W=W, Wt=Wt,
        KH=KH, KW=KW, TCin=TCin)
    # TODO(synk): when the whole weight fits VMEM, switch to a grid-invariant
    # weight BlockSpec and slice the (k, co) tile in-kernel to avoid re-DMA per n.
    y2d, stats = pl.pallas_call(
        conv_kernel,
        out_shape=(
            jax.ShapeDtypeStruct((R, Cout_p), jnp.bfloat16),
            jax.ShapeDtypeStruct((N, 2, Cout_p), jnp.float32),
        ),
        grid_spec=pltpu.PrefetchScalarGridSpec(
            num_scalar_prefetch=0,
            grid=(N, n_cout, n_cin),
            in_specs=[
                pl.BlockSpec((1, Hp, Wp, TCin), lambda n, co, k: (n, 0, 0, k)),
                pl.BlockSpec((1, KH * KW * TCin, TCout), lambda n, co, k: (k, 0, co)),
            ],
            out_specs=[
                pl.BlockSpec((H * Wt, TCout), lambda n, co, k: (n, co)),
                pl.BlockSpec((1, 2, TCout), lambda n, co, k: (n, 0, co)),
            ],
            scratch_shapes=[pltpu.VMEM((H * Wt, TCout), jnp.float32)],
        ),
        compiler_params=pltpu.CompilerParams(
            dimension_semantics=("parallel", "parallel", "arbitrary"),
            vmem_limit_bytes=vmem_limit,
        ),
    )(xp, w)

    # Tiny glue: whole-batch BN affine (scale/shift) from the partial stats.
    stats_sum = jnp.sum(stats, axis=0)                       # (2, Cout_p) f32
    count = float(N * H * W)
    mean = stats_sum[0] / count
    var = jnp.maximum(stats_sum[1] / count - mean * mean, 0.0)  # biased, clamped
    inv = lax.rsqrt(var + eps)
    gamma_p = jnp.pad(gamma.astype(jnp.float32), (0, Cout_p - Cout),
                      constant_values=1.0)
    beta_p = jnp.pad(beta.astype(jnp.float32), (0, Cout_p - Cout))
    scale_vec = gamma_p * inv
    shift_vec = beta_p - mean * scale_vec
    scale = scale_vec[None, :]                               # (1, Cout_p)
    shift = shift_vec[None, :]                               # (1, Cout_p)

    # --- Pass 2: y*scale + shift, ReLU, over lane-dense row tiles -------------
    TR = _pick_row_tile(R)
    out2d = pl.pallas_call(
        _bn_relu_kernel,
        out_shape=jax.ShapeDtypeStruct((R, Cout_p), jnp.bfloat16),
        grid_spec=pltpu.PrefetchScalarGridSpec(
            num_scalar_prefetch=0,
            grid=(R // TR,),
            in_specs=[
                pl.BlockSpec((TR, Cout_p), lambda r: (r, 0)),
                pl.BlockSpec((1, Cout_p), lambda r: (0, 0)),
                pl.BlockSpec((1, Cout_p), lambda r: (0, 0)),
            ],
            out_specs=pl.BlockSpec((TR, Cout_p), lambda r: (r, 0)),
        ),
        input_output_aliases={0: 0},  # overwrite y in place (no extra HBM alloc)
        compiler_params=pltpu.CompilerParams(
            dimension_semantics=("parallel",),
            vmem_limit_bytes=vmem_limit,
        ),
    )(y2d, scale, shift)

    # Glue: drop width/channel padding, back to NCHW (PyTorch convention).
    out = out2d.reshape(N, H, Wt, Cout_p)[:, :, :W, :Cout]
    return jnp.transpose(out, (0, 3, 1, 2))


def aspp_forward(x_nchw, w_oihw, gamma, beta, dilation, eps=1e-5):
    wide_mxu, vmem_limit = _tpu_flavor()
    return _aspp_forward_jit(x_nchw, w_oihw, gamma, beta,
                             int(dilation), float(eps),
                             bool(wide_mxu), int(vmem_limit))


# ----------------------------------------------------------------------------
# Pure-JAX reference (PyTorch semantics: dilated conv, training-mode BatchNorm
# with biased batch variance, ReLU).
# ----------------------------------------------------------------------------
def aspp_reference(x, w, gamma, beta, dilation, eps=1e-5):
    pad = 0 if w.shape[2] == 1 else dilation
    y = lax.conv_general_dilated(
        x, w, window_strides=(1, 1),
        padding=[(pad, pad), (pad, pad)],
        rhs_dilation=(dilation, dilation),
        dimension_numbers=('NCHW', 'OIHW', 'NCHW'))
    mean = y.mean(axis=(0, 2, 3), keepdims=True)
    var = y.var(axis=(0, 2, 3), keepdims=True)  # biased
    yn = (y - mean) / jnp.sqrt(var + eps)
    yn = yn * gamma[None, :, None, None] + beta[None, :, None, None]
    return jnp.maximum(yn, 0.0)


if __name__ == "__main__":
    key = jax.random.PRNGKey(0)

    configs = [
        # (N, Cin, H, W, Cout, dilation)
        (2, 4, 16, 16, 8, 2),   # 3x3 atrous conv, sublane-aligned width
        (2, 4, 10, 12, 8, 2),   # 3x3 atrous conv, width padded 12 -> 16
        (2, 4, 10, 12, 8, 1),   # 1x1 conv branch (dilation == 1)
    ]
    for (N, Cin, H, W, Cout, dilation) in configs:
        k_x, k_w, key = jax.random.split(key, 3)
        KH = KW = 1 if dilation == 1 else 3

        x = jax.random.normal(k_x, (N, Cin, H, W), jnp.float32)
        # _init_weight: normal(0, sqrt(2/n)), n = kh*kw*out_ch; BN gamma=1, beta=0.
        n_fan = KH * KW * Cout
        w = jax.random.normal(k_w, (Cout, Cin, KH, KW), jnp.float32) * np.sqrt(2.0 / n_fan)
        gamma = jnp.ones((Cout,), jnp.float32)
        beta = jnp.zeros((Cout,), jnp.float32)

        out = jax.block_until_ready(aspp_forward(x, w, gamma, beta, dilation))
        assert out.shape == (N, Cout, H, W)

        # Reference on the same bf16-quantized operands (kernel uses bf16 inputs
        # with f32 MXU accumulation; y is stored in bf16).
        x_q = x.astype(jnp.bfloat16).astype(jnp.float32)
        w_q = w.astype(jnp.bfloat16).astype(jnp.float32)
        ref = aspp_reference(x_q, w_q, gamma, beta, dilation)

        np.testing.assert_allclose(np.asarray(out, dtype=np.float32),
                                   np.asarray(ref), atol=3e-2, rtol=3e-2)

    print("KERNEL_OK")
</pallas_src>

<mosaic_0001>
module attributes {stable_mosaic.version = 11 : i64} {
  func.func @_bn_relu_kernel(%arg0: i32, %arg1: memref<512x128xbf16, #tpu.memory_space<vmem>>, %arg2: memref<1x128xf32, #tpu.memory_space<vmem>>, %arg3: memref<1x128xf32, #tpu.memory_space<vmem>>, %arg4: memref<512x128xbf16, #tpu.memory_space<vmem>>) attributes {dimension_semantics = [#tpu.dimension_semantics<parallel>], iteration_bounds = array<i64: 1>, scalar_prefetch = 0 : i64, scratch_operands = 0 : i64, tpu.core_type = #tpu.core_type<tc>, window_params = [{transform_indices = @transform_0, window_bounds = array<i64: 512, 128>}, {pipeline_mode = #tpu.pipeline_mode<synchronous>, transform_indices = @transform_1, window_bounds = array<i64: 1, 128>}, {pipeline_mode = #tpu.pipeline_mode<synchronous>, transform_indices = @transform_2, window_bounds = array<i64: 1, 128>}, {transform_indices = @transform_3, window_bounds = array<i64: 512, 128>}]} {
    %c0 = arith.constant 0 : index
    %c0_0 = arith.constant 0 : index
    %0 = vector.load %arg1[%c0, %c0_0] : memref<512x128xbf16, #tpu.memory_space<vmem>>, vector<512x128xbf16>
    %1 = arith.extf %0 : vector<512x128xbf16> to vector<512x128xf32>
    %c0_1 = arith.constant 0 : index
    %c0_2 = arith.constant 0 : index
    %2 = vector.load %arg2[%c0_1, %c0_2] : memref<1x128xf32, #tpu.memory_space<vmem>>, vector<1x128xf32>
    %3 = vector.broadcast %2 : vector<1x128xf32> to vector<512x128xf32>
    %4 = arith.mulf %1, %3 : vector<512x128xf32>
    %c0_3 = arith.constant 0 : index
    %c0_4 = arith.constant 0 : index
    %5 = vector.load %arg3[%c0_3, %c0_4] : memref<1x128xf32, #tpu.memory_space<vmem>>, vector<1x128xf32>
    %6 = vector.broadcast %5 : vector<1x128xf32> to vector<512x128xf32>
    %7 = arith.addf %4, %6 : vector<512x128xf32>
    %cst = arith.constant 0.000000e+00 : f32
    %8 = vector.broadcast %cst : f32 to vector<512x128xf32>
    %9 = arith.maximumf %7, %8 : vector<512x128xf32>
    %10 = arith.truncf %9 : vector<512x128xf32> to vector<512x128xbf16>
    %c0_5 = arith.constant 0 : index
    %c0_6 = arith.constant 0 : index
    %11 = vector.load %arg4[%c0_5, %c0_6] : memref<512x128xbf16, #tpu.memory_space<vmem>>, vector<512x128xbf16>
    tpu.vector_store %arg4[%c0_5, %c0_6], %10 {strides = array<i32>} : memref<512x128xbf16, #tpu.memory_space<vmem>>, vector<512x128xbf16>,
    return
  }
  func.func @transform_0(%arg0: i32) -> (i32, i32) {
    %c0_i32 = arith.constant 0 : i32
    %c0_i32_0 = arith.constant 0 : i32
    return %arg0, %c0_i32 : i32, i32
  }
  func.func @transform_1(%arg0: i32) -> (i32, i32) {
    %c0_i32 = arith.constant 0 : i32
    %c0_i32_0 = arith.constant 0 : i32
    %c0_i32_1 = arith.constant 0 : i32
    return %c0_i32, %c0_i32_0 : i32, i32
  }
  func.func @transform_2(%arg0: i32) -> (i32, i32) {
    %c0_i32 = arith.constant 0 : i32
    %c0_i32_0 = arith.constant 0 : i32
    %c0_i32_1 = arith.constant 0 : i32
    return %c0_i32, %c0_i32_0 : i32, i32
  }
  func.func @transform_3(%arg0: i32) -> (i32, i32) {
    %c0_i32 = arith.constant 0 : i32
    %c0_i32_0 = arith.constant 0 : i32
    return %arg0, %c0_i32 : i32, i32
  }
}

module attributes {stable_mosaic.version = 11 : i64} {
  func.func @_conv_stats_kernel(%arg0: i32, %arg1: i32, %arg2: i32, %arg3: memref<1x20x20x128xbf16, #tpu.memory_space<vmem>>, %arg4: memref<1x1152x128xbf16, #tpu.memory_space<vmem>>, %arg5: memref<256x128xbf16, #tpu.memory_space<vmem>>, %arg6: memref<1x2x128xf32, #tpu.memory_space<vmem>>, %arg7: memref<256x128xf32, #tpu.memory_space<vmem>>) attributes {dimension_semantics = [#tpu.dimension_semantics<parallel>, #tpu.dimension_semantics<parallel>, #tpu.dimension_semantics<arbitrary>], iteration_bounds = array<i64: 2, 1, 1>, scalar_prefetch = 0 : i64, scratch_operands = 1 : i64, tpu.core_type = #tpu.core_type<tc>, window_params = [{transform_indices = @transform_0, window_bounds = array<i64: 1, 20, 20, 128>}, {transform_indices = @transform_1, window_bounds = array<i64: 1, 1152, 128>}, {transform_indices = @transform_2, window_bounds = array<i64: 256, 128>}, {transform_indices = @transform_3, window_bounds = array<i64: 1, 2, 128>}]} {
    %c0 = arith.constant 0 : index
    %c0_0 = arith.constant 0 : index
    %c0_1 = arith.constant 0 : index
    %c0_2 = arith.constant 0 : index
    %0 = vector.load %arg3[%c0, %c0_0, %c0_1, %c0_2] : memref<1x20x20x128xbf16, #tpu.memory_space<vmem>>, vector<1x20x16x128xbf16>
    %1 = vector.shape_cast %0 : vector<1x20x16x128xbf16> to vector<20x16x128xbf16>
    %2 = vector.shape_cast %1 : vector<20x16x128xbf16> to vector<320x128xbf16>
    %3 = vector.extract_strided_slice %2 {offsets = [0, 0], sizes = [256, 128], strides = [1, 1]} : vector<320x128xbf16> to vector<256x128xbf16>
    %c0_3 = arith.constant 0 : index
    %c0_4 = arith.constant 0 : index
    %c0_5 = arith.constant 0 : index
    %4 = vector.load %arg4[%c0_3, %c0_4, %c0_5] : memref<1x1152x128xbf16, #tpu.memory_space<vmem>>, vector<1x128x128xbf16>
    %5 = vector.shape_cast %4 : vector<1x128x128xbf16> to vector<128x128xbf16>
    %cst = arith.constant dense<0.000000e+00> : vector<256x128xf32>
    %6 = tpu.matmul %3, %5, %cst {dimension_numbers = #tpu.dot_dimension_numbers<[1], [0], [0], [1], [0, 0, 1, 1], [], []>} : vector<256x128xbf16>, vector<128x128xbf16>, vector<256x128xf32> -> vector<256x128xf32>
    %c0_i32 = arith.constant 0 : i32
    %7 = arith.cmpi eq, %arg2, %c0_i32 : i32
    %8 = arith.extui %7 : i1 to i32
    %c0_i32_6 = arith.constant 0 : i32
    %9 = arith.cmpi ne, %8, %c0_i32_6 : i32
    scf.if %9 {
      %c0_73 = arith.constant 0 : index
      %c0_74 = arith.constant 0 : index
      %78 = vector.load %arg7[%c0_73, %c0_74] : memref<256x128xf32, #tpu.memory_space<vmem>>, vector<256x128xf32>
      tpu.vector_store %arg7[%c0_73, %c0_74], %6 {strides = array<i32>} : memref<256x128xf32, #tpu.memory_space<vmem>>, vector<256x128xf32>,
    } else {
    }
    %c0_i32_7 = arith.constant 0 : i32
    %10 = arith.cmpi sgt, %arg2, %c0_i32_7 : i32
    %11 = arith.extui %10 : i1 to i32
    %c0_i32_8 = arith.constant 0 : i32
    %12 = arith.cmpi ne, %11, %c0_i32_8 : i32
    scf.if %12 {
      %c0_73 = arith.constant 0 : index
      %c0_74 = arith.constant 0 : index
      %78 = vector.load %arg7[%c0_73, %c0_74] : memref<256x128xf32, #tpu.memory_space<vmem>>, vector<256x128xf32>
      %79 = arith.addf %78, %6 : vector<256x128xf32>
      %c0_75 = arith.constant 0 : index
      %c0_76 = arith.constant 0 : index
      %80 = vector.load %arg7[%c0_75, %c0_76] : memref<256x128xf32, #tpu.memory_space<vmem>>, vector<256x128xf32>
      tpu.vector_store %arg7[%c0_75, %c0_76], %79 {strides = array<i32>} : memref<256x128xf32, #tpu.memory_space<vmem>>, vector<256x128xf32>,
    } else {
    }
    %13 = vector.extract_strided_slice %2 {offsets = [32, 0], sizes = [256, 128], strides = [1, 1]} : vector<320x128xbf16> to vector<256x128xbf16>
    %c0_9 = arith.constant 0 : index
    %c384 = arith.constant 384 : index
    %c0_10 = arith.constant 0 : index
    %14 = vector.load %arg4[%c0_9, %c384, %c0_10] : memref<1x1152x128xbf16, #tpu.memory_space<vmem>>, vector<1x128x128xbf16>
    %15 = vector.shape_cast %14 : vector<1x128x128xbf16> to vector<128x128xbf16>
    %cst_11 = arith.constant dense<0.000000e+00> : vector<256x128xf32>
    %16 = tpu.matmul %13, %15, %cst_11 {dimension_numbers = #tpu.dot_dimension_numbers<[1], [0], [0], [1], [0, 0, 1, 1], [], []>} : vector<256x128xbf16>, vector<128x128xbf16>, vector<256x128xf32> -> vector<256x128xf32>
    %c0_12 = arith.constant 0 : index
    %c0_13 = arith.constant 0 : index
    %17 = vector.load %arg7[%c0_12, %c0_13] : memref<256x128xf32, #tpu.memory_space<vmem>>, vector<256x128xf32>
    %18 = arith.addf %17, %16 : vector<256x128xf32>
    %c0_14 = arith.constant 0 : index
    %c0_15 = arith.constant 0 : index
    %19 = vector.load %arg7[%c0_14, %c0_15] : memref<256x128xf32, #tpu.memory_space<vmem>>, vector<256x128xf32>
    tpu.vector_store %arg7[%c0_14, %c0_15], %18 {strides = array<i32>} : memref<256x128xf32, #tpu.memory_space<vmem>>, vector<256x128xf32>,
    %20 = vector.extract_strided_slice %2 {offsets = [64, 0], sizes = [256, 128], strides = [1, 1]} : vector<320x128xbf16> to vector<256x128xbf16>
    %c0_16 = arith.constant 0 : index
    %c768 = arith.constant 768 : index
    %c0_17 = arith.constant 0 : index
    %21 = vector.load %arg4[%c0_16, %c768, %c0_17] : memref<1x1152x128xbf16, #tpu.memory_space<vmem>>, vector<1x128x128xbf16>
    %22 = vector.shape_cast %21 : vector<1x128x128xbf16> to vector<128x128xbf16>
    %cst_18 = arith.constant dense<0.000000e+00> : vector<256x128xf32>
    %23 = tpu.matmul %20, %22, %cst_18 {dimension_numbers = #tpu.dot_dimension_numbers<[1], [0], [0], [1], [0, 0, 1, 1], [], []>} : vector<256x128xbf16>, vector<128x128xbf16>, vector<256x128xf32> -> vector<256x128xf32>
    %c0_19 = arith.constant 0 : index
    %c0_20 = arith.constant 0 : index
    %24 = vector.load %arg7[%c0_19, %c0_20] : memref<256x128xf32, #tpu.memory_space<vmem>>, vector<256x128xf32>
    %25 = arith.addf %24, %23 : vector<256x128xf32>
    %c0_21 = arith.constant 0 : index
    %c0_22 = arith.constant 0 : index
    %26 = vector.load %arg7[%c0_21, %c0_22] : memref<256x128xf32, #tpu.memory_space<vmem>>, vector<256x128xf32>
    tpu.vector_store %arg7[%c0_21, %c0_22], %25 {strides = array<i32>} : memref<256x128xf32, #tpu.memory_space<vmem>>, vector<256x128xf32>,
    %c0_23 = arith.constant 0 : index
    %c0_24 = arith.constant 0 : index
    %c2 = arith.constant 2 : index
    %c0_25 = arith.constant 0 : index
    %27 = vector.load %arg3[%c0_23, %c0_24, %c2, %c0_25] : memref<1x20x20x128xbf16, #tpu.memory_space<vmem>>, vector<1x20x16x128xbf16>
    %28 = vector.shape_cast %27 : vector<1x20x16x128xbf16> to vector<20x16x128xbf16>
    %29 = vector.shape_cast %28 : vector<20x16x128xbf16> to vector<320x128xbf16>
    %30 = vector.extract_strided_slice %29 {offsets = [0, 0], sizes = [256, 128], strides = [1, 1]} : vector<320x128xbf16> to vector<256x128xbf16>
    %c0_26 = arith.constant 0 : index
    %c128 = arith.constant 128 : index
    %c0_27 = arith.constant 0 : index
    %31 = vector.load %arg4[%c0_26, %c128, %c0_27] : memref<1x1152x128xbf16, #tpu.memory_space<vmem>>, vector<1x128x128xbf16>
    %32 = vector.shape_cast %31 : vector<1x128x128xbf16> to vector<128x128xbf16>
    %cst_28 = arith.constant dense<0.000000e+00> : vector<256x128xf32>
    %33 = tpu.matmul %30, %32, %cst_28 {dimension_numbers = #tpu.dot_dimension_numbers<[1], [0], [0], [1], [0, 0, 1, 1], [], []>} : vector<256x128xbf16>, vector<128x128xbf16>, vector<256x128xf32> -> vector<256x128xf32>
    %c0_29 = arith.constant 0 : index
    %c0_30 = arith.constant 0 : index
    %34 = vector.load %arg7[%c0_29, %c0_30] : memref<256x128xf32, #tpu.memory_space<vmem>>, vector<256x128xf32>
    %35 = arith.addf %34, %33 : vector<256x128xf32>
    %c0_31 = arith.constant 0 : index
    %c0_32 = arith.constant 0 : index
    %36 = vector.load %arg7[%c0_31, %c0_32] : memref<256x128xf32, #tpu.memory_space<vmem>>, vector<256x128xf32>
    tpu.vector_store %arg7[%c0_31, %c0_32], %35 {strides = array<i32>} : memref<256x128xf32, #tpu.memory_space<vmem>>, vector<256x128xf32>,
    %37 = vector.extract_strided_slice %29 {offsets = [32, 0], sizes = [256, 128], strides = [1, 1]} : vector<320x128xbf16> to vector<256x128xbf16>
    %c0_33 = arith.constant 0 : index
    %c512 = arith.constant 512 : index
    %c0_34 = arith.constant 0 : index
    %38 = vector.load %arg4[%c0_33, %c512, %c0_34] : memref<1x1152x128xbf16, #tpu.memory_space<vmem>>, vector<1x128x128xbf16>
    %39 = vector.shape_cast %38 : vector<1x128x128xbf16> to vector<128x128xbf16>
    %cst_35 = arith.constant dense<0.000000e+00> : vector<256x128xf32>
    %40 = tpu.matmul %37, %39, %cst_35 {dimension_numbers = #tpu.dot_dimension_numbers<[1], [0], [0], [1], [0, 0, 1, 1], [], []>} : vector<256x128xbf16>, vector<128x128xbf16>, vector<256x128xf32> -> vector<256x128xf32>
    %c0_36 = arith.constant 0 : index
    %c0_37 = arith.constant 0 : index
    %41 = vector.load %arg7[%c0_36, %c0_37] : memref<256x128xf32, #tpu.memory_space<vmem>>, vector<256x128xf32>
    %42 = arith.addf %41, %40 : vector<256x128xf32>
    %c0_38 = arith.constant 0 : index
    %c0_39 = arith.constant 0 : index
    %43 = vector.load %arg7[%c0_38, %c0_39] : memref<256x128xf32, #tpu.memory_space<vmem>>, vector<256x128xf32>
    tpu.vector_store %arg7[%c0_38, %c0_39], %42 {strides = array<i32>} : memref<256x128xf32, #tpu.memory_space<vmem>>, vector<256x128xf32>,
    %44 = vector.extract_strided_slice %29 {offsets = [64, 0], sizes = [256, 128], strides = [1, 1]} : vector<320x128xbf16> to vector<256x128xbf16>
    %c0_40 = arith.constant 0 : index
    %c896 = arith.constant 896 : index
    %c0_41 = arith.constant 0 : index
    %45 = vector.load %arg4[%c0_40, %c896, %c0_41] : memref<1x1152x128xbf16, #tpu.memory_space<vmem>>, vector<1x128x128xbf16>
    %46 = vector.shape_cast %45 : vector<1x128x128xbf16> to vector<128x128xbf16>
    %cst_42 = arith.constant dense<0.000000e+00> : vector<256x128xf32>
    %47 = tpu.matmul %44, %46, %cst_42 {dimension_numbers = #tpu.dot_dimension_numbers<[1], [0], [0], [1], [0, 0, 1, 1], [], []>} : vector<256x128xbf16>, vector<128x128xbf16>, vector<256x128xf32> -> vector<256x128xf32>
    %c0_43 = arith.constant 0 : index
    %c0_44 = arith.constant 0 : index
    %48 = vector.load %arg7[%c0_43, %c0_44] : memref<256x128xf32, #tpu.memory_space<vmem>>, vector<256x128xf32>
    %49 = arith.addf %48, %47 : vector<256x128xf32>
    %c0_45 = arith.constant 0 : index
    %c0_46 = arith.constant 0 : index
    %50 = vector.load %arg7[%c0_45, %c0_46] : memref<256x128xf32, #tpu.memory_space<vmem>>, vector<256x128xf32>
    tpu.vector_store %arg7[%c0_45, %c0_46], %49 {strides = array<i32>} : memref<256x128xf32, #tpu.memory_space<vmem>>, vector<256x128xf32>,
    %c0_47 = arith.constant 0 : index
    %c0_48 = arith.constant 0 : index
    %c4 = arith.constant 4 : index
    %c0_49 = arith.constant 0 : index
    %51 = vector.load %arg3[%c0_47, %c0_48, %c4, %c0_49] : memref<1x20x20x128xbf16, #tpu.memory_space<vmem>>, vector<1x20x16x128xbf16>
    %52 = vector.shape_cast %51 : vector<1x20x16x128xbf16> to vector<20x16x128xbf16>
    %53 = vector.shape_cast %52 : vector<20x16x128xbf16> to vector<320x128xbf16>
    %54 = vector.extract_strided_slice %53 {offsets = [0, 0], sizes = [256, 128], strides = [1, 1]} : vector<320x128xbf16> to vector<256x128xbf16>
    %c0_50 = arith.constant 0 : index
    %c256 = arith.constant 256 : index
    %c0_51 = arith.constant 0 : index
    %55 = vector.load %arg4[%c0_50, %c256, %c0_51] : memref<1x1152x128xbf16, #tpu.memory_space<vmem>>, vector<1x128x128xbf16>
    %56 = vector.shape_cast %55 : vector<1x128x128xbf16> to vector<128x128xbf16>
    %cst_52 = arith.constant dense<0.000000e+00> : vector<256x128xf32>
    %57 = tpu.matmul %54, %56, %cst_52 {dimension_numbers = #tpu.dot_dimension_numbers<[1], [0], [0], [1], [0, 0, 1, 1], [], []>} : vector<256x128xbf16>, vector<128x128xbf16>, vector<256x128xf32> -> vector<256x128xf32>
    %c0_53 = arith.constant 0 : index
    %c0_54 = arith.constant 0 : index
    %58 = vector.load %arg7[%c0_53, %c0_54] : memref<256x128xf32, #tpu.memory_space<vmem>>, vector<256x128xf32>
    %59 = arith.addf %58, %57 : vector<256x128xf32>
    %c0_55 = arith.constant 0 : index
    %c0_56 = arith.constant 0 : index
    %60 = vector.load %arg7[%c0_55, %c0_56] : memref<256x128xf32, #tpu.memory_space<vmem>>, vector<256x128xf32>
    tpu.vector_store %arg7[%c0_55, %c0_56], %59 {strides = array<i32>} : memref<256x128xf32, #tpu.memory_space<vmem>>, vector<256x128xf32>,
    %61 = vector.extract_strided_slice %53 {offsets = [32, 0], sizes = [256, 128], strides = [1, 1]} : vector<320x128xbf16> to vector<256x128xbf16>
    %c0_57 = arith.constant 0 : index
    %c640 = arith.constant 640 : index
    %c0_58 = arith.constant 0 : index
    %62 = vector.load %arg4[%c0_57, %c640, %c0_58] : memref<1x1152x128xbf16, #tpu.memory_space<vmem>>, vector<1x128x128xbf16>
    %63 = vector.shape_cast %62 : vector<1x128x128xbf16> to vector<128x128xbf16>
    %cst_59 = arith.constant dense<0.000000e+00> : vector<256x128xf32>
    %64 = tpu.matmul %61, %63, %cst_59 {dimension_numbers = #tpu.dot_dimension_numbers<[1], [0], [0], [1], [0, 0, 1, 1], [], []>} : vector<256x128xbf16>, vector<128x128xbf16>, vector<256x128xf32> -> vector<256x128xf32>
    %c0_60 = arith.constant 0 : index
    %c0_61 = arith.constant 0 : index
    %65 = vector.load %arg7[%c0_60, %c0_61] : memref<256x128xf32, #tpu.memory_space<vmem>>, vector<256x128xf32>
    %66 = arith.addf %65, %64 : vector<256x128xf32>
    %c0_62 = arith.constant 0 : index
    %c0_63 = arith.constant 0 : index
    %67 = vector.load %arg7[%c0_62, %c0_63] : memref<256x128xf32, #tpu.memory_space<vmem>>, vector<256x128xf32>
    tpu.vector_store %arg7[%c0_62, %c0_63], %66 {strides = array<i32>} : memref<256x128xf32, #tpu.memory_space<vmem>>, vector<256x128xf32>,
    %68 = vector.extract_strided_slice %53 {offsets = [64, 0], sizes = [256, 128], strides = [1, 1]} : vector<320x128xbf16> to vector<256x128xbf16>
    %c0_64 = arith.constant 0 : index
    %c1024 = arith.constant 1024 : index
    %c0_65 = arith.constant 0 : index
    %69 = vector.load %arg4[%c0_64, %c1024, %c0_65] : memref<1x1152x128xbf16, #tpu.memory_space<vmem>>, vector<1x128x128xbf16>
    %70 = vector.shape_cast %69 : vector<1x128x128xbf16> to vector<128x128xbf16>
    %cst_66 = arith.constant dense<0.000000e+00> : vector<256x128xf32>
    %71 = tpu.matmul %68, %70, %cst_66 {dimension_numbers = #tpu.dot_dimension_numbers<[1], [0], [0], [1], [0, 0, 1, 1], [], []>} : vector<256x128xbf16>, vector<128x128xbf16>, vector<256x128xf32> -> vector<256x128xf32>
    %c0_67 = arith.constant 0 : index
    %c0_68 = arith.constant 0 : index
    %72 = vector.load %arg7[%c0_67, %c0_68] : memref<256x128xf32, #tpu.memory_space<vmem>>, vector<256x128xf32>
    %73 = arith.addf %72, %71 : vector<256x128xf32>
    %c0_69 = arith.constant 0 : index
    %c0_70 = arith.constant 0 : index
    %74 = vector.load %arg7[%c0_69, %c0_70] : memref<256x128xf32, #tpu.memory_space<vmem>>, vector<256x128xf32>
    tpu.vector_store %arg7[%c0_69, %c0_70], %73 {strides = array<i32>} : memref<256x128xf32, #tpu.memory_space<vmem>>, vector<256x128xf32>,
    %c0_i32_71 = arith.constant 0 : i32
    %75 = arith.cmpi eq, %arg2, %c0_i32_71 : i32
    %76 = arith.extui %75 : i1 to i32
    %c0_i32_72 = arith.constant 0 : i32
    %77 = arith.cmpi ne, %76, %c0_i32_72 : i32
    scf.if %77 {
      %c0_73 = arith.constant 0 : index
      %c0_74 = arith.constant 0 : index
      %78 = vector.load %arg7[%c0_73, %c0_74] : memref<256x128xf32, #tpu.memory_space<vmem>>, vector<256x128xf32>
      %79 = arith.truncf %78 : vector<256x128xf32> to vector<256x128xbf16>
      %c0_75 = arith.constant 0 : index
      %c0_76 = arith.constant 0 : index
      %80 = vector.load %arg5[%c0_75, %c0_76] : memref<256x128xbf16, #tpu.memory_space<vmem>>, vector<256x128xbf16>
      tpu.vector_store %arg5[%c0_75, %c0_76], %79 {strides = array<i32>} : memref<256x128xbf16, #tpu.memory_space<vmem>>, vector<256x128xbf16>,
      %cst_77 = arith.constant dense<0.000000e+00> : vector<128xf32>
      %81 = vector.multi_reduction <add>, %78, %cst_77 [0] : vector<256x128xf32> to vector<128xf32>
      %82 = arith.mulf %78, %78 : vector<256x128xf32>
      %cst_78 = arith.constant dense<0.000000e+00> : vector<128xf32>
      %83 = vector.multi_reduction <add>, %82, %cst_78 [0] : vector<256x128xf32> to vector<128xf32>
      %84 = vector.shape_cast %81 : vector<128xf32> to vector<1x128xf32>
      %85 = vector.shape_cast %83 : vector<128xf32> to vector<1x128xf32>
      %86 = tpu.concatenate %84, %85 in 0 : vector<1x128xf32>, vector<1x128xf32> -> vector<2x128xf32>
      %c0_79 = arith.constant 0 : index
      %c0_80 = arith.constant 0 : index
      %c0_81 = arith.constant 0 : index
      %87 = vector.load %arg6[%c0_79, %c0_80, %c0_81] : memref<1x2x128xf32, #tpu.memory_space<vmem>>, vector<1x2x128xf32>
      %88 = vector.shape_cast %87 : vector<1x2x128xf32> to vector<2x128xf32>
      %89 = vector.shape_cast %86 : vector<2x128xf32> to vector<1x2x128xf32>
      tpu.vector_store %arg6[%c0_79, %c0_80, %c0_81], %89 {strides = array<i32>} : memref<1x2x128xf32, #tpu.memory_space<vmem>>, vector<1x2x128xf32>,
    } else {
    }
    return
  }
  func.func @transform_0(%arg0: i32, %arg1: i32, %arg2: i32) -> (i32, i32, i32, i32) {
    %c0_i32 = arith.constant 0 : i32
    %c0_i32_0 = arith.constant 0 : i32
    %c0_i32_1 = arith.constant 0 : i32
    return %arg0, %c0_i32, %c0_i32_0, %arg2 : i32, i32, i32, i32
  }
  func.func @transform_1(%arg0: i32, %arg1: i32, %arg2: i32) -> (i32, i32, i32) {
    %c0_i32 = arith.constant 0 : i32
    %c0_i32_0 = arith.constant 0 : i32
    return %arg2, %c0_i32, %arg1 : i32, i32, i32
  }
  func.func @transform_2(%arg0: i32, %arg1: i32, %arg2: i32) -> (i32, i32) {
    %c0_i32 = arith.constant 0 : i32
    return %arg0, %arg1 : i32, i32
  }
  func.func @transform_3(%arg0: i32, %arg1: i32, %arg2: i32) -> (i32, i32, i32) {
    %c0_i32 = arith.constant 0 : i32
    %c0_i32_0 = arith.constant 0 : i32
    return %arg0, %c0_i32, %arg1 : i32, i32, i32
  }
}

</mosaic_0001>

<bundles_post_ra>
// kernel: _aspp_forward_jit.3
= control target key start
LH: loop header
LB: loop body
LE: loop exit
PB: predicated region body
PF: predicated region fallthrough
CT: control target
= control target key end

     0   :  { %8 = vsyncpa [#allocation3], 0  ;;  %s1523_s0 = inlined_call_operand.hbm [shape: bf16[512,128], index: 0, kind: input, shape index: {}, may-alias: {0,3}]   ;;  %s1524_s1 = inlined_call_operand.hbm [shape: f32[1,128], index: 1, kind: input, shape index: {}]   ;;  %s1525_s2 = inlined_call_operand.hbm [shape: f32[1,128], index: 2, kind: input, shape index: {}]   ;;  %s1526_s3 = inlined_call_operand.hbm [shape: bf16[512,128], index: 3, kind: output, shape index: {}, may-alias: {0,3}]  }
   0x1   :  { %9 = vsyncpa [#allocation6], 0 }
   0x2   :  { %10 = vsyncpa [#allocation4], 0  ;;  %s1304_s12 = smov [#allocation5]   ;;  %s1305_s14 = smov [#allocation2]  }
   0x3   :  { %s29_s13 = sshll.u32 %s1304_s12, 4  ;;  %s16_s15 = sshll.u32 %s1305_s14, 4  ;;  %s30_s13 = int_to_ptr.vmem [resolvable:$true] %s29_s13  ;;  %s1330_s15 = int_to_ptr.vmem [resolvable:$true] %s16_s15 }
   0x4   :  { %s1210_s18 = scalar_lea.hbm %s1524_s1, 16 }
   0x5   :  { %p1211_p0 = scmp.ne.s32.totalorder %s1524_s1, %s1210_s18  ;;  %p1214_p1 = scmp.lt.u32.totalorder %s1210_s18, %s1524_s1 }
   0x7   :  { %p1216_p2 = pnand %p1214_p1, %p1211_p0 }
   0x9   :  { %1219 = shalt.err (!%p1216_p2)
}
   0xa   :  { %s1220_s23 = scalar_lea.vmem %s30_s13, 16  ;;  %s1224_s24 = scalar_lea.vmem %s30_s13, 32 }
   0xb   :  { %p1221_p3 = scmp.ne.s32.totalorder %s30_s13, %s1220_s23  ;;  %p1225_p4 = scmp.lt.s32.totalorder %s30_s13, %s30_s13 }
   0xc   :  { %p1226_p5 = scmp.lt.s32.totalorder %s1224_s24, %s1220_s23 }
   0xe   :  { %p1227_p6 = por %p1226_p5, %p1225_p4 }
  0x10   :  { %p1228_p7 = pnand %p1227_p6, %p1221_p3 }
  0x12   :  { %1231 = shalt.err (!%p1228_p7)
}
  0x13   :  { %32 = dma.hbm_to_vmem [thread:$0]  %s1524_s1, 16, %s30_s13, [#allocation6]  }
  0x14   :  { %s1232_s29 = scalar_lea.hbm %s1523_s0, 4096 }
  0x15   :  { %p1233_p8 = scmp.ne.s32.totalorder %s1523_s0, %s1232_s29  ;;  %p1236_p9 = scmp.lt.u32.totalorder %s1232_s29, %s1523_s0 }
  0x17   :  { %p1238_p10 = pnand %p1236_p9, %p1233_p8 }
  0x19   :  { %1241 = shalt.err (!%p1238_p10)
}
  0x1a   :  { %s1242_s7 = scalar_lea.vmem %s1330_s15, 4096  ;;  %p1247_p12 = scmp.lt.s32.totalorder %s1330_s15, %s1330_s15 }
  0x1b   :  { %p1243_p11 = scmp.ne.s32.totalorder %s1330_s15, %s1242_s7  ;;  %p1248_p13 = scmp.lt.s32.totalorder %s1242_s7, %s1242_s7 }
  0x1d   :  { %p1249_p0 = por %p1248_p13, %p1247_p12 }
  0x1f   :  { %p1250_p1 = pnand %p1249_p0, %p1243_p11 }
  0x21   :  { %1253 = shalt.err (!%p1250_p1)
}
  0x22   :  { %s1306_s1 = smov 64   ;;  %s1307_s8 = smov 4  }
  0x23   :  { %22 = dma.hbm_to_vmem [thread:$0]  %s1523_s0, 4096, %s1330_s15, [#allocation3], %s1306_s1, %s1306_s1, %s1307_s8  }
  0x24   :  { %s1308_s11 = smov [#allocation7]   ;;  %s1254_s16 = scalar_lea.hbm %s1525_s2, 16 }
  0x25   :  { %s39_s12 = sshll.u32 %s1308_s11, 4  ;;  %p1255_p2 = scmp.ne.s32.totalorder %s1525_s2, %s1254_s16  ;;  %s40_s12 = int_to_ptr.vmem [resolvable:$true] %s39_s12 }
  0x26   :  { %p1258_p3 = scmp.lt.u32.totalorder %s1254_s16, %s1525_s2 }
  0x28   :  { %p1260_p4 = pnand %p1258_p3, %p1255_p2 }
  0x2a   :  { %1263 = shalt.err (!%p1260_p4)
}
  0x2b   :  { %s1264_s21 = scalar_lea.vmem %s40_s12, 16  ;;  %s1268_s0 = scalar_lea.vmem %s40_s12, 32 }
  0x2c   :  { %p1265_p5 = scmp.ne.s32.totalorder %s40_s12, %s1264_s21  ;;  %p1269_p6 = scmp.lt.s32.totalorder %s40_s12, %s40_s12 }
  0x2d   :  { %p1270_p7 = scmp.lt.s32.totalorder %s1268_s0, %s1264_s21 }
  0x2f   :  { %p1271_p8 = por %p1270_p7, %p1269_p6 }
  0x31   :  { %p1272_p9 = pnand %p1271_p8, %p1265_p5 }
  0x33   :  { %1275 = shalt.err (!%p1272_p9)
}
  0x34   :  { %42 = dma.hbm_to_vmem [thread:$0]  %s1525_s2, 16, %s40_s12, [#allocation6]  }
  0x35   :  { %1298 = dma.done.wait [#allocation3], 4096  }
  0x36   :  { %1299 = vsyncadd [#allocation3], 4294963200 }
  0x37   :  { %1300 = dma.done.wait [#allocation6], 32  }
  0x38   :  { %1301 = vsyncadd [#allocation6], 4294967264  ;;  %v855_v0 = vld [vmem:[#allocation2] sm:$0xff]   ;;  %v1142_v4 = vld [vmem:[#allocation2 + $0x8] sm:$0xff]   ;;  %s1309_s2 = smov [#allocation8]  }
  0x39   :  { %v1376_v1 = vld [vmem:[#allocation5] ss:$0 sm:$0xff]  ;;  %v856_v2 = vunpack.c.l.bf16 %v855_v0  ;;  %v857_v3 = vunpack.c.h.bf16 %v855_v0  ;;  %v1143_v5 = vld [vmem:[#allocation2 + $0x10] sm:$0xff]   ;;  %v1144_v6 = vld [vmem:[#allocation2 + $0x18] sm:$0xff]   ;;  %v860_v8 = vunpack.c.l.bf16 %v1142_v4  ;;  %v861_v9 = vunpack.c.h.bf16 %v1142_v4  ;;  %s711_s23 = sshll.u32 %s1309_s2, 4  ;;  %s712_s23 = int_to_ptr.vmem [resolvable:$true] %s711_s23 }
  0x3a   :  { %v1378_v7 = vld [vmem:[#allocation7] ss:$0 sm:$0xff]  ;;  %v864_v10 = vunpack.c.l.bf16 %v1143_v5  ;;  %v865_v11 = vunpack.c.h.bf16 %v1143_v5  ;;  %v868_v14 = vunpack.c.l.bf16 %v1144_v6  ;;  %v869_v15 = vunpack.c.h.bf16 %v1144_v6  ;;  %v1146_v33 = vld [vmem:[#allocation2 + $0x28] sm:$0xff]   ;;  %v1147_v38 = vld [vmem:[#allocation2 + $0x30] sm:$0xff]   ;;  %s1276_s24 = scalar_lea.vmem %s712_s23, 4096  ;;  %p1281_p11 = scmp.lt.s32.totalorder %s712_s23, %s712_s23 }
  0x3b   :  { %v187_v12 = vmul.f32 %v856_v2, %v1376_v1  ;;  %v188_v13 = vmul.f32 %v857_v3, %v1376_v1  ;;  %v189_v16 = vmul.f32 %v860_v8, %v1376_v1  ;;  %v190_v17 = vmul.f32 %v861_v9, %v1376_v1  ;;  %v1145_v28 = vld [vmem:[#allocation2 + $0x20] sm:$0xff]   ;;  %v1148_v43 = vld [vmem:[#allocation2 + $0x38] sm:$0xff]   ;;  %p1277_p10 = scmp.ne.s32.totalorder %s712_s23, %s1276_s24  ;;  %p1282_p12 = scmp.lt.s32.totalorder %s1276_s24, %s1276_s24 }
  0x3c   :  { %v191_v18 = vmul.f32 %v864_v10, %v1376_v1  ;;  %v192_v19 = vmul.f32 %v865_v11, %v1376_v1  ;;  %v193_v22 = vmul.f32 %v868_v14, %v1376_v1  ;;  %v194_v23 = vmul.f32 %v869_v15, %v1376_v1  ;;  %v1149_v0 = vld [vmem:[#allocation2 + $0x40] sm:$0xff]   ;;  %v1150_v11 = vld [vmem:[#allocation2 + $0x48] sm:$0xff]  }
  0x3d   :  { %v258_v20 = vadd.f32 %v1378_v7, %v187_v12  ;;  %v259_v21 = vadd.f32 %v1378_v7, %v188_v13  ;;  %v260_v24 = vadd.f32 %v1378_v7, %v189_v16  ;;  %v261_v25 = vadd.f32 %v1378_v7, %v190_v17  ;;  %v1151_v16 = vld [vmem:[#allocation2 + $0x50] sm:$0xff]   ;;  %p1283_p13 = por %p1282_p12, %p1281_p11 }
  0x3e   :  { %v262_v26 = vadd.f32 %v1378_v7, %v191_v18  ;;  %v263_v27 = vadd.f32 %v1378_v7, %v192_v19  ;;  %v264_v31 = vadd.f32 %v1378_v7, %v193_v22  ;;  %v265_v32 = vadd.f32 %v1378_v7, %v194_v23 }
  0x3f   :  { %v322_v29 = vmax.f32 %v258_v20, 0.0  ;;  %v323_v30 = vmax.f32 %v259_v21, 0.0  ;;  %v324_v34 = vmax.f32 %v260_v24, 0.0  ;;  %v325_v35 = vmax.f32 %v261_v25, 0.0  ;;  %v1152_v25 = vld [vmem:[#allocation2 + $0x58] sm:$0xff]   ;;  %p1284_p0 = pnand %p1283_p13, %p1277_p10 }
  0x40   :  { %v326_v36 = vmax.f32 %v262_v26, 0.0  ;;  %v327_v37 = vmax.f32 %v263_v27, 0.0  ;;  %v328_v40 = vmax.f32 %v264_v31, 0.0  ;;  %v329_v41 = vmax.f32 %v265_v32, 0.0 }
  0x41   :  { %v985_v39 = vpack.c.bf16 %v323_v30, %v322_v29  ;;  %v872_v42 = vunpack.c.l.bf16 %v1145_v28  ;;  %v990_v44 = vpack.c.bf16 %v325_v35, %v324_v34  ;;  %v873_v46 = vunpack.c.h.bf16 %v1145_v28 }
  0x42   :  { %v995_v45 = vpack.c.bf16 %v327_v37, %v326_v36  ;;  %v876_v47 = vunpack.c.l.bf16 %v1146_v33  ;;  %v1000_v48 = vpack.c.bf16 %v329_v41, %v328_v40  ;;  %v877_v50 = vunpack.c.h.bf16 %v1146_v33 }
  0x43   :  { %986 = vst [vmem:[#allocation8] sm:$0xff] %v985_v39   ;;  %v195_v49 = vmul.f32 %v872_v42, %v1376_v1  ;;  %v880_v51 = vunpack.c.l.bf16 %v1147_v38  ;;  %1173 = vst [vmem:[#allocation8 + $0x8] sm:$0xff] %v990_v44   ;;  %v196_v52 = vmul.f32 %v873_v46, %v1376_v1  ;;  %v881_v54 = vunpack.c.h.bf16 %v1147_v38  ;;  %v1153_v38 = vld [vmem:[#allocation2 + $0x60] sm:$0xff]  }
  0x44   :  { %1174 = vst [vmem:[#allocation8 + $0x10] sm:$0xff] %v995_v45   ;;  %v197_v53 = vmul.f32 %v876_v47, %v1376_v1  ;;  %v884_v55 = vunpack.c.l.bf16 %v1148_v43  ;;  %1175 = vst [vmem:[#allocation8 + $0x18] sm:$0xff] %v1000_v48   ;;  %v198_v57 = vmul.f32 %v877_v50, %v1376_v1  ;;  %v885_v59 = vunpack.c.h.bf16 %v1148_v43 }
  0x45   :  { %v266_v56 = vadd.f32 %v1378_v7, %v195_v49  ;;  %v199_v58 = vmul.f32 %v880_v51, %v1376_v1  ;;  %v267_v60 = vadd.f32 %v1378_v7, %v196_v52  ;;  %v200_v62 = vmul.f32 %v881_v54, %v1376_v1  ;;  %v1154_v51 = vld [vmem:[#allocation2 + $0x68] sm:$0xff]  }
  0x46   :  { %v268_v61 = vadd.f32 %v1378_v7, %v197_v53  ;;  %v201_v63 = vmul.f32 %v884_v55, %v1376_v1  ;;  %v269_v3 = vadd.f32 %v1378_v7, %v198_v57  ;;  %v202_v5 = vmul.f32 %v885_v59, %v1376_v1 }
  0x47   :  { %v330_v2 = vmax.f32 %v266_v56, 0.0  ;;  %v270_v4 = vadd.f32 %v1378_v7, %v199_v58  ;;  %v331_v6 = vmax.f32 %v267_v60, 0.0  ;;  %v271_v9 = vadd.f32 %v1378_v7, %v200_v62  ;;  %v1155_v60 = vld [vmem:[#allocation2 + $0x70] sm:$0xff]  }
  0x48   :  { %v332_v8 = vmax.f32 %v268_v61, 0.0  ;;  %v272_v10 = vadd.f32 %v1378_v7, %v201_v63  ;;  %v333_v12 = vmax.f32 %v269_v3, 0.0  ;;  %v273_v14 = vadd.f32 %v1378_v7, %v202_v5 }
  0x49   :  { %v334_v13 = vmax.f32 %v270_v4, 0.0  ;;  %v888_v15 = vunpack.c.l.bf16 %v1149_v0  ;;  %v1005_v17 = vpack.c.bf16 %v331_v6, %v330_v2  ;;  %v335_v18 = vmax.f32 %v271_v9, 0.0  ;;  %v1156_v2 = vld [vmem:[#allocation2 + $0x78] sm:$0xff]  }
  0x4a   :  { %v336_v19 = vmax.f32 %v272_v10, 0.0  ;;  %v889_v20 = vunpack.c.h.bf16 %v1149_v0  ;;  %v1010_v21 = vpack.c.bf16 %v333_v12, %v332_v8  ;;  %v337_v22 = vmax.f32 %v273_v14, 0.0  ;;  %v1157_v12 = vld [vmem:[#allocation2 + $0x80] sm:$0xff]  }
  0x4b   :  { %v203_v23 = vmul.f32 %v888_v15, %v1376_v1  ;;  %v892_v24 = vunpack.c.l.bf16 %v1150_v11  ;;  %1176 = vst [vmem:[#allocation8 + $0x20] sm:$0xff] %v1005_v17   ;;  %v1015_v26 = vpack.c.bf16 %v335_v18, %v334_v13  ;;  %v893_v28 = vunpack.c.h.bf16 %v1150_v11 }
  0x4c   :  { %v204_v27 = vmul.f32 %v889_v20, %v1376_v1  ;;  %v896_v29 = vunpack.c.l.bf16 %v1151_v16  ;;  %1177 = vst [vmem:[#allocation8 + $0x28] sm:$0xff] %v1010_v21   ;;  %v1020_v30 = vpack.c.bf16 %v337_v22, %v336_v19  ;;  %v897_v33 = vunpack.c.h.bf16 %v1151_v16 }
  0x4d   :  { %v274_v31 = vadd.f32 %v1378_v7, %v203_v23  ;;  %v205_v32 = vmul.f32 %v892_v24, %v1376_v1  ;;  %1178 = vst [vmem:[#allocation8 + $0x30] sm:$0xff] %v1015_v26   ;;  %v206_v35 = vmul.f32 %v893_v28, %v1376_v1  ;;  %v900_v37 = vunpack.c.l.bf16 %v1152_v25 }
  0x4e   :  { %v275_v34 = vadd.f32 %v1378_v7, %v204_v27  ;;  %v207_v36 = vmul.f32 %v896_v29, %v1376_v1  ;;  %1179 = vst [vmem:[#allocation8 + $0x38] sm:$0xff] %v1020_v30   ;;  %v208_v41 = vmul.f32 %v897_v33, %v1376_v1  ;;  %v901_v42 = vunpack.c.h.bf16 %v1152_v25  ;;  %v1158_v29 = vld [vmem:[#allocation2 + $0x88] sm:$0xff]  }
  0x4f   :  { %v338_v39 = vmax.f32 %v274_v31, 0.0  ;;  %v276_v40 = vadd.f32 %v1378_v7, %v205_v32  ;;  %v277_v44 = vadd.f32 %v1378_v7, %v206_v35  ;;  %v209_v46 = vmul.f32 %v900_v37, %v1376_v1 }
  0x50   :  { %v339_v43 = vmax.f32 %v275_v34, 0.0  ;;  %v278_v45 = vadd.f32 %v1378_v7, %v207_v36  ;;  %v279_v48 = vadd.f32 %v1378_v7, %v208_v41  ;;  %v210_v49 = vmul.f32 %v901_v42, %v1376_v1  ;;  %v1159_v34 = vld [vmem:[#allocation2 + $0x90] sm:$0xff]  }
  0x51   :  { %v340_v47 = vmax.f32 %v276_v40, 0.0  ;;  %v904_v50 = vunpack.c.l.bf16 %v1153_v38  ;;  %v341_v53 = vmax.f32 %v277_v44, 0.0  ;;  %v280_v55 = vadd.f32 %v1378_v7, %v209_v46 }
  0x52   :  { %v1025_v52 = vpack.c.bf16 %v339_v43, %v338_v39  ;;  %v342_v54 = vmax.f32 %v278_v45, 0.0  ;;  %v343_v56 = vmax.f32 %v279_v48, 0.0  ;;  %v281_v57 = vadd.f32 %v1378_v7, %v210_v49  ;;  %v1160_v43 = vld [vmem:[#allocation2 + $0x98] sm:$0xff]  }
  0x53   :  { %v905_v58 = vunpack.c.h.bf16 %v1153_v38  ;;  %v211_v59 = vmul.f32 %v904_v50, %v1376_v1  ;;  %v1030_v61 = vpack.c.bf16 %v341_v53, %v340_v47  ;;  %v344_v62 = vmax.f32 %v280_v55, 0.0 }
  0x54   :  { %1180 = vst [vmem:[#allocation8 + $0x40] sm:$0xff] %v1025_v52   ;;  %v908_v63 = vunpack.c.l.bf16 %v1154_v51  ;;  %v909_v0 = vunpack.c.h.bf16 %v1154_v51  ;;  %v1035_v3 = vpack.c.bf16 %v343_v56, %v342_v54  ;;  %v345_v4 = vmax.f32 %v281_v57, 0.0  ;;  %v1161_v56 = vld [vmem:[#allocation2 + $0xa0] sm:$0xff]  }
  0x55   :  { %v212_v5 = vmul.f32 %v905_v58, %v1376_v1  ;;  %v282_v6 = vadd.f32 %v1378_v7, %v211_v59  ;;  %1181 = vst [vmem:[#allocation8 + $0x48] sm:$0xff] %v1030_v61   ;;  %v912_v10 = vunpack.c.l.bf16 %v1155_v60  ;;  %v913_v11 = vunpack.c.h.bf16 %v1155_v60 }
  0x56   :  { %v213_v8 = vmul.f32 %v908_v63, %v1376_v1  ;;  %v214_v9 = vmul.f32 %v909_v0, %v1376_v1  ;;  %1182 = vst [vmem:[#allocation8 + $0x50] sm:$0xff] %v1035_v3   ;;  %v1040_v13 = vpack.c.bf16 %v345_v4, %v344_v62  ;;  %v916_v16 = vunpack.c.l.bf16 %v1156_v2 }
  0x57   :  { %v283_v14 = vadd.f32 %v1378_v7, %v212_v5  ;;  %v346_v15 = vmax.f32 %v282_v6, 0.0  ;;  %v215_v19 = vmul.f32 %v912_v10, %v1376_v1  ;;  %v216_v20 = vmul.f32 %v913_v11, %v1376_v1 }
  0x58   :  { %v284_v17 = vadd.f32 %v1378_v7, %v213_v8  ;;  %v285_v18 = vadd.f32 %v1378_v7, %v214_v9  ;;  %1183 = vst [vmem:[#allocation8 + $0x58] sm:$0xff] %v1040_v13   ;;  %v917_v22 = vunpack.c.h.bf16 %v1156_v2  ;;  %v217_v23 = vmul.f32 %v916_v16, %v1376_v1  ;;  %v1162_v2 = vld [vmem:[#allocation2 + $0xa8] sm:$0xff]   ;;  %v1163_v16 = vld [vmem:[#allocation2 + $0xb0] sm:$0xff]  }
  0x59   :  { %v347_v21 = vmax.f32 %v283_v14, 0.0  ;;  %v920_v24 = vunpack.c.l.bf16 %v1157_v12  ;;  %v286_v27 = vadd.f32 %v1378_v7, %v215_v19  ;;  %v287_v28 = vadd.f32 %v1378_v7, %v216_v20 }
  0x5a   :  { %v348_v25 = vmax.f32 %v284_v17, 0.0  ;;  %v349_v26 = vmax.f32 %v285_v18, 0.0  ;;  %v218_v31 = vmul.f32 %v917_v22, %v1376_v1  ;;  %v288_v32 = vadd.f32 %v1378_v7, %v217_v23 }
  0x5b   :  { %v1045_v30 = vpack.c.bf16 %v347_v21, %v346_v15  ;;  %v921_v33 = vunpack.c.h.bf16 %v1157_v12  ;;  %v350_v36 = vmax.f32 %v286_v27, 0.0  ;;  %v351_v37 = vmax.f32 %v287_v28, 0.0  ;;  %v1164_v21 = vld [vmem:[#allocation2 + $0xb8] sm:$0xff]  }
  0x5c   :  { %v1050_v35 = vpack.c.bf16 %v349_v26, %v348_v25  ;;  %v219_v38 = vmul.f32 %v920_v24, %v1376_v1  ;;  %v289_v39 = vadd.f32 %v1378_v7, %v218_v31  ;;  %v352_v40 = vmax.f32 %v288_v32, 0.0 }
  0x5d   :  { %1184 = vst [vmem:[#allocation8 + $0x60] sm:$0xff] %v1045_v30   ;;  %v220_v41 = vmul.f32 %v921_v33, %v1376_v1  ;;  %v924_v42 = vunpack.c.l.bf16 %v1158_v29  ;;  %v1055_v44 = vpack.c.bf16 %v351_v37, %v350_v36  ;;  %v925_v46 = vunpack.c.h.bf16 %v1158_v29 }
  0x5e   :  { %1185 = vst [vmem:[#allocation8 + $0x68] sm:$0xff] %v1050_v35   ;;  %v290_v45 = vadd.f32 %v1378_v7, %v219_v38  ;;  %v928_v47 = vunpack.c.l.bf16 %v1159_v34  ;;  %v353_v48 = vmax.f32 %v289_v39, 0.0  ;;  %v929_v51 = vunpack.c.h.bf16 %v1159_v34  ;;  %v1165_v34 = vld [vmem:[#allocation2 + $0xc0] sm:$0xff]  }
  0x5f   :  { %v291_v49 = vadd.f32 %v1378_v7, %v220_v41  ;;  %v221_v50 = vmul.f32 %v924_v42, %v1376_v1  ;;  %1186 = vst [vmem:[#allocation8 + $0x70] sm:$0xff] %v1055_v44   ;;  %v222_v53 = vmul.f32 %v925_v46, %v1376_v1  ;;  %v932_v55 = vunpack.c.l.bf16 %v1160_v43 }
  0x60   :  { %v354_v52 = vmax.f32 %v290_v45, 0.0  ;;  %v223_v54 = vmul.f32 %v928_v47, %v1376_v1  ;;  %v1060_v57 = vpack.c.bf16 %v353_v48, %v352_v40  ;;  %v224_v60 = vmul.f32 %v929_v51, %v1376_v1  ;;  %v1166_v47 = vld [vmem:[#allocation2 + $0xc8] sm:$0xff]  }
  0x61   :  { %v355_v58 = vmax.f32 %v291_v49, 0.0  ;;  %v292_v59 = vadd.f32 %v1378_v7, %v221_v50  ;;  %v293_v61 = vadd.f32 %v1378_v7, %v222_v53  ;;  %v933_v63 = vunpack.c.h.bf16 %v1160_v43 }
  0x62   :  { %v294_v62 = vadd.f32 %v1378_v7, %v223_v54  ;;  %v225_v0 = vmul.f32 %v932_v55, %v1376_v1  ;;  %1187 = vst [vmem:[#allocation8 + $0x78] sm:$0xff] %v1060_v57   ;;  %v295_v5 = vadd.f32 %v1378_v7, %v224_v60  ;;  %v936_v6 = vunpack.c.l.bf16 %v1161_v56 }
  0x63   :  { %v1065_v3 = vpack.c.bf16 %v355_v58, %v354_v52  ;;  %v356_v4 = vmax.f32 %v292_v59, 0.0  ;;  %v357_v8 = vmax.f32 %v293_v61, 0.0  ;;  %v226_v10 = vmul.f32 %v933_v63, %v1376_v1  ;;  %v1167_v52 = vld [vmem:[#allocation2 + $0xd0] sm:$0xff]   ;;  %v1168_v61 = vld [vmem:[#allocation2 + $0xd8] sm:$0xff]  }
  0x64   :  { %v358_v9 = vmax.f32 %v294_v62, 0.0  ;;  %v296_v11 = vadd.f32 %v1378_v7, %v225_v0  ;;  %v359_v12 = vmax.f32 %v295_v5, 0.0  ;;  %v937_v13 = vunpack.c.h.bf16 %v1161_v56 }
  0x65   :  { %1188 = vst [vmem:[#allocation8 + $0x80] sm:$0xff] %v1065_v3   ;;  %v227_v14 = vmul.f32 %v936_v6, %v1376_v1  ;;  %v940_v15 = vunpack.c.l.bf16 %v1162_v2  ;;  %v1070_v17 = vpack.c.bf16 %v357_v8, %v356_v4  ;;  %v297_v18 = vadd.f32 %v1378_v7, %v226_v10 }
  0x66   :  { %v360_v19 = vmax.f32 %v296_v11, 0.0  ;;  %v941_v20 = vunpack.c.h.bf16 %v1162_v2  ;;  %v1075_v22 = vpack.c.bf16 %v359_v12, %v358_v9  ;;  %v228_v23 = vmul.f32 %v937_v13, %v1376_v1  ;;  %v1169_v12 = vld [vmem:[#allocation2 + $0xe0] sm:$0xff]  }
  0x67   :  { %v298_v24 = vadd.f32 %v1378_v7, %v227_v14  ;;  %v229_v25 = vmul.f32 %v940_v15, %v1376_v1  ;;  %1189 = vst [vmem:[#allocation8 + $0x88] sm:$0xff] %v1070_v17   ;;  %v361_v26 = vmax.f32 %v297_v18, 0.0  ;;  %v944_v28 = vunpack.c.l.bf16 %v1163_v16 }
  0x68   :  { %v230_v27 = vmul.f32 %v941_v20, %v1376_v1  ;;  %v945_v29 = vunpack.c.h.bf16 %v1163_v16  ;;  %1190 = vst [vmem:[#allocation8 + $0x90] sm:$0xff] %v1075_v22   ;;  %v299_v30 = vadd.f32 %v1378_v7, %v228_v23  ;;  %v948_v33 = vunpack.c.l.bf16 %v1164_v21 }
  0x69   :  { %v362_v31 = vmax.f32 %v298_v24, 0.0  ;;  %v300_v32 = vadd.f32 %v1378_v7, %v229_v25  ;;  %v1080_v35 = vpack.c.bf16 %v361_v26, %v360_v19  ;;  %v231_v37 = vmul.f32 %v944_v28, %v1376_v1 }
  0x6a   :  { %v301_v36 = vadd.f32 %v1378_v7, %v230_v27  ;;  %v232_v38 = vmul.f32 %v945_v29, %v1376_v1  ;;  %v363_v39 = vmax.f32 %v299_v30, 0.0  ;;  %v949_v41 = vunpack.c.h.bf16 %v1164_v21  ;;  %v1170_v21 = vld [vmem:[#allocation2 + $0xe8] sm:$0xff]  }
  0x6b   :  { %v364_v40 = vmax.f32 %v300_v32, 0.0  ;;  %v233_v42 = vmul.f32 %v948_v33, %v1376_v1  ;;  %1191 = vst [vmem:[#allocation8 + $0x98] sm:$0xff] %v1080_v35   ;;  %v302_v44 = vadd.f32 %v1378_v7, %v231_v37  ;;  %v952_v46 = vunpack.c.l.bf16 %v1165_v34 }
  0x6c   :  { %v365_v43 = vmax.f32 %v301_v36, 0.0  ;;  %v303_v45 = vadd.f32 %v1378_v7, %v232_v38  ;;  %v1085_v48 = vpack.c.bf16 %v363_v39, %v362_v31  ;;  %v234_v49 = vmul.f32 %v949_v41, %v1376_v1  ;;  %v1172_v39 = vld [vmem:[#allocation2 + $0xf8] sm:$0xff]  }
  0x6d   :  { %v304_v50 = vadd.f32 %v1378_v7, %v233_v42  ;;  %v953_v51 = vunpack.c.h.bf16 %v1165_v34  ;;  %v366_v54 = vmax.f32 %v302_v44, 0.0  ;;  %v235_v56 = vmul.f32 %v952_v46, %v1376_v1  ;;  %v1171_v34 = vld [vmem:[#allocation2 + $0xf0] sm:$0xff]  }
  0x6e   :  { %v1090_v53 = vpack.c.bf16 %v365_v43, %v364_v40  ;;  %v367_v55 = vmax.f32 %v303_v45, 0.0  ;;  %1192 = vst [vmem:[#allocation8 + $0xa0] sm:$0xff] %v1085_v48   ;;  %v305_v57 = vadd.f32 %v1378_v7, %v234_v49  ;;  %v956_v60 = vunpack.c.l.bf16 %v1166_v47 }
  0x6f   :  { %v368_v58 = vmax.f32 %v304_v50, 0.0  ;;  %v236_v59 = vmul.f32 %v953_v51, %v1376_v1  ;;  %v306_v63 = vadd.f32 %v1378_v7, %v235_v56  ;;  %v957_v0 = vunpack.c.h.bf16 %v1166_v47 }
  0x70   :  { %1193 = vst [vmem:[#allocation8 + $0xa8] sm:$0xff] %v1090_v53   ;;  %v1095_v62 = vpack.c.bf16 %v367_v55, %v366_v54  ;;  %v960_v2 = vunpack.c.l.bf16 %v1167_v52  ;;  %v369_v3 = vmax.f32 %v305_v57, 0.0  ;;  %v237_v5 = vmul.f32 %v956_v60, %v1376_v1 }
  0x71   :  { %v307_v4 = vadd.f32 %v1378_v7, %v236_v59  ;;  %v961_v6 = vunpack.c.h.bf16 %v1167_v52  ;;  %v370_v8 = vmax.f32 %v306_v63, 0.0  ;;  %v238_v9 = vmul.f32 %v957_v0, %v1376_v1 }
  0x72   :  { %1194 = vst [vmem:[#allocation8 + $0xb0] sm:$0xff] %v1095_v62   ;;  %v239_v10 = vmul.f32 %v960_v2, %v1376_v1  ;;  %v964_v11 = vunpack.c.l.bf16 %v1168_v61  ;;  %v1100_v13 = vpack.c.bf16 %v369_v3, %v368_v58  ;;  %v308_v15 = vadd.f32 %v1378_v7, %v237_v5 }
  0x73   :  { %v371_v14 = vmax.f32 %v307_v4, 0.0  ;;  %v240_v16 = vmul.f32 %v961_v6, %v1376_v1  ;;  %v309_v17 = vadd.f32 %v1378_v7, %v238_v9  ;;  %v965_v19 = vunpack.c.h.bf16 %v1168_v61 }
  0x74   :  { %v310_v18 = vadd.f32 %v1378_v7, %v239_v10  ;;  %v241_v20 = vmul.f32 %v964_v11, %v1376_v1  ;;  %1195 = vst [vmem:[#allocation8 + $0xb8] sm:$0xff] %v1100_v13   ;;  %v372_v23 = vmax.f32 %v308_v15, 0.0  ;;  %v968_v25 = vunpack.c.l.bf16 %v1169_v12 }
  0x75   :  { %v1105_v22 = vpack.c.bf16 %v371_v14, %v370_v8  ;;  %v311_v24 = vadd.f32 %v1378_v7, %v240_v16  ;;  %v373_v26 = vmax.f32 %v309_v17, 0.0  ;;  %v242_v28 = vmul.f32 %v965_v19, %v1376_v1 }
  0x76   :  { %v374_v27 = vmax.f32 %v310_v18, 0.0  ;;  %v312_v29 = vadd.f32 %v1378_v7, %v241_v20  ;;  %v969_v31 = vunpack.c.h.bf16 %v1169_v12  ;;  %v243_v32 = vmul.f32 %v968_v25, %v1376_v1 }
  0x77   :  { %1196 = vst [vmem:[#allocation8 + $0xc0] sm:$0xff] %v1105_v22   ;;  %v375_v30 = vmax.f32 %v311_v24, 0.0  ;;  %v972_v33 = vunpack.c.l.bf16 %v1170_v21  ;;  %v1110_v35 = vpack.c.bf16 %v373_v26, %v372_v23  ;;  %v313_v36 = vadd.f32 %v1378_v7, %v242_v28 }
  0x78   :  { %v376_v37 = vmax.f32 %v312_v29, 0.0  ;;  %v973_v38 = vunpack.c.h.bf16 %v1170_v21  ;;  %v244_v41 = vmul.f32 %v969_v31, %v1376_v1  ;;  %v314_v42 = vadd.f32 %v1378_v7, %v243_v32 }
  0x79   :  { %v1115_v40 = vpack.c.bf16 %v375_v30, %v374_v27  ;;  %v245_v43 = vmul.f32 %v972_v33, %v1376_v1  ;;  %1197 = vst [vmem:[#allocation8 + $0xc8] sm:$0xff] %v1110_v35   ;;  %v377_v44 = vmax.f32 %v313_v36, 0.0  ;;  %v976_v46 = vunpack.c.l.bf16 %v1171_v34 }
  0x7a   :  { %v246_v45 = vmul.f32 %v973_v38, %v1376_v1  ;;  %v977_v47 = vunpack.c.h.bf16 %v1171_v34  ;;  %v315_v48 = vadd.f32 %v1378_v7, %v244_v41  ;;  %v378_v49 = vmax.f32 %v314_v42, 0.0 }
  0x7b   :  { %1198 = vst [vmem:[#allocation8 + $0xd0] sm:$0xff] %v1115_v40   ;;  %v316_v50 = vadd.f32 %v1378_v7, %v245_v43  ;;  %v980_v51 = vunpack.c.l.bf16 %v1172_v39  ;;  %v1120_v52 = vpack.c.bf16 %v377_v44, %v376_v37  ;;  %v247_v54 = vmul.f32 %v976_v46, %v1376_v1 }
  0x7c   :  { %v317_v53 = vadd.f32 %v1378_v7, %v246_v45  ;;  %v248_v55 = vmul.f32 %v977_v47, %v1376_v1  ;;  %v379_v56 = vmax.f32 %v315_v48, 0.0  ;;  %v981_v58 = vunpack.c.h.bf16 %v1172_v39 }
  0x7d   :  { %v380_v57 = vmax.f32 %v316_v50, 0.0  ;;  %v249_v59 = vmul.f32 %v980_v51, %v1376_v1  ;;  %1199 = vst [vmem:[#allocation8 + $0xd8] sm:$0xff] %v1120_v52   ;;  %v318_v61 = vadd.f32 %v1378_v7, %v247_v54 }
  0x7e   :  { %v381_v60 = vmax.f32 %v317_v53, 0.0  ;;  %v319_v62 = vadd.f32 %v1378_v7, %v248_v55  ;;  %v1125_v63 = vpack.c.bf16 %v379_v56, %v378_v49  ;;  %v250_v0 = vmul.f32 %v981_v58, %v1376_v1 }
  0x7f   :  { %v320_v2 = vadd.f32 %v1378_v7, %v249_v59  ;;  %v382_v4 = vmax.f32 %v318_v61, 0.0 }
  0x80   :  { %v1130_v3 = vpack.c.bf16 %v381_v60, %v380_v57  ;;  %v383_v5 = vmax.f32 %v319_v62, 0.0  ;;  %1200 = vst [vmem:[#allocation8 + $0xe0] sm:$0xff] %v1125_v63   ;;  %v321_v6 = vadd.f32 %v1378_v7, %v250_v0 }
  0x81   :  { %v384_v8 = vmax.f32 %v320_v2, 0.0 }
  0x82   :  { %1201 = vst [vmem:[#allocation8 + $0xe8] sm:$0xff] %v1130_v3   ;;  %v1135_v9 = vpack.c.bf16 %v383_v5, %v382_v4  ;;  %v385_v10 = vmax.f32 %v321_v6, 0.0 }
  0x84   :  { %1202 = vst [vmem:[#allocation8 + $0xf0] sm:$0xff] %v1135_v9   ;;  %v1140_v11 = vpack.c.bf16 %v385_v10, %v384_v8 }
  0x86   :  { %1203 = vst [vmem:[#allocation8 + $0xf8] sm:$0xff] %v1140_v11  }
  0x87   :  { %1287 = shalt.err (!%p1284_p0)
}
  0x88   :  { %s1288_s27 = scalar_lea.hbm %s1526_s3, 4096 }
  0x89   :  { %p1289_p1 = scmp.ne.s32.totalorder %s1526_s3, %s1288_s27  ;;  %p1292_p2 = scmp.lt.u32.totalorder %s1288_s27, %s1526_s3 }
  0x8b   :  { %p1294_p3 = pnand %p1292_p2, %p1289_p1 }
  0x8d   :  { %1297 = shalt.err (!%p1294_p3)
}
  0x8e   :  { %717 = dma.vmem_to_hbm [thread:$0]  %s712_s23, 4096, %s1526_s3, [#allocation4], %s1306_s1, %s1306_s1, %s1307_s8  }
  0x8f   :  { %1302 = dma.done.wait [#allocation4], 4096  }
  0x90   :  { %1303 = vsyncadd [#allocation4], 4294963200 }
  0x91   :  { %721 = vsyncpa [#allocation3], 1 }
  0x92   :  { %722 = vsyncpa [#allocation6], 1 }
  0x93   :  { %723 = vsyncpa [#allocation4], 1 }

// kernel: _aspp_forward_jit.2
= control target key start
LH: loop header
LB: loop body
LE: loop exit
PB: predicated region body
PF: predicated region fallthrough
CT: control target
= control target key end

     0   :  { %9 = vsyncpa [#allocation4], 0  ;;  %s6998_s0 = inlined_call_operand.hbm [shape: bf16[2,20,20,128], index: 0, kind: input, shape index: {}]   ;;  %s6999_s1 = inlined_call_operand.hbm [shape: bf16[1,1152,128], index: 1, kind: input, shape index: {}]   ;;  %s7000_s2 = inlined_call_operand.hbm [shape: bf16[512,128], index: 2, kind: output, shape index: {0}]   ;;  %s7001_s3 = inlined_call_operand.hbm [shape: f32[2,2,128], index: 3, kind: output, shape index: {1}]  }
   0x1   :  { %11 = vsyncpa [#allocation4 + $0x1], 0 }
   0x2   :  { %12 = vsyncpa [#allocation7], 0 }
   0x3   :  { %13 = vsyncpa [#allocation5], 0 }
   0x4   :  { %15 = vsyncpa [#allocation5 + $0x1], 0 }
   0x5   :  { %16 = vsyncpa [#allocation10], 0 }
   0x6   :  { %18 = vsyncpa [#allocation10 + $0x1], 0  ;;  %s6165_s12 = smov 0   ;;  %s6167_s13 = smov 0  }
   0x7   :  { %s6169_s14 = smov 0   ;;  %s6171_s15 = smov 0  }
   0x8   :  { %s6173_s16 = smov 0   ;;  %s6175_s17 = smov 0  }
   0x9 LB: > { %s4502_s18 = sadd.s32 4294967295, %s6135_s17   ;;  %s4503_s19 = sadd.s32 4294967294, %s6135_s17   ;;  %s6135_s17 = sphi %s6175_s17, %s24_s17   ;;  %s6131_s16 = sphi %s6173_s16, %s7028_s16   ;;  %s6127_s15 = sphi %s6171_s15, %s7027_s15   ;;  %s6123_s14 = sphi %s6169_s14, %s7026_s14   ;;  %s6119_s13 = sphi %s6167_s13, %s7025_s13   ;;  %s6115_s12 = sphi %s6165_s12, %s7024_s12  }
   0xa   : > { %p65_p0 = scmp.ne.s32.totalorder %s6119_s13, %s6115_s12  ;;  %p6199_p1 = scmp.eq.s32.totalorder %s4502_s18, 0 }
   0xb   : > { %p6203_p2 = scmp.eq.s32.totalorder %s4502_s18, 1  ;;  %p125_p3 = scmp.eq.s32.totalorder %s4503_s19, 1 }
   0xc   : > { %s7006_s20 = scalar_select %p6199_p1, 1, 0 }
   0xd   : > { %s7007_s21 = scalar_select %p6203_p2, 1, 0 }
   0xe   : > { %p6209_p4 = por %p6199_p1, %p65_p0  ;;  %p4504_p5 = scmp.ge.s32.totalorder %s6135_s17, 1 }
   0xf   : > { %p6214_p6 = por %p125_p3, %p65_p0  ;;  %p160_p7 = scmp.lt.s32.totalorder %s6135_s17, 3 }
  0x10   : > { %s7008_s22 = scalar_select %p6209_p4, 1, 0 }
  0x11   : > { %s7009_s23 = scalar_select %p6214_p6, 1, 0 }
  0x12   : > { %p6219_p8 = pnand %p4504_p5, %p160_p7  ;;  %s6137_s25 = smov [#allocation6]  }
  0x13   : > { %s176_s26 = sshll.u32 %s6137_s25, 4  ;;  %s43_s28 = sadd.s32 1, %s6131_s16  ;;  %s177_s26 = int_to_ptr.vmem [resolvable:$true] %s176_s26 }
  0x14   : > { %s7010_s24 = scalar_select %p6219_p8, 1, 0 }
  0x15   : > { %p5784_p9 = pneg %p6219_p8  ;;  %s5959_s4 = scalar_lea.hbm %s6999_s1, 9216 }
  0x16   : > { %p5960_p12 = scmp.ne.s32.totalorder %s6999_s1, %s5959_s4  ;;  %p5966_p5 = scmp.lt.u32.totalorder %s5959_s4, %s6999_s1 }
  0x17   : > { %p6228_p11 = pnand %p5784_p9, %p6199_p1 }
  0x19   : > { %p5961_p13 = pneg %p6228_p11 }
  0x1b   : > { %p5962_p0 = pnand %p5961_p13, %p5960_p12 }
  0x1d   : > { %p5963_p3 = pneg %p5962_p0 }
  0x1f   : > { %p5968_p7 = pnand %p5966_p5, %p5963_p3 }
  0x21   : > { %5971 = shalt.err (!%p5968_p7)
}
  0x22   : > { %s5972_s9 = scalar_lea.vmem %s177_s26, 9216  ;;  %p5980_p1 = scmp.lt.s32.totalorder %s177_s26, %s177_s26 }
  0x23   : > { %p5973_p9 = scmp.ne.s32.totalorder %s177_s26, %s5972_s9  ;;  %p5981_p4 = scmp.lt.s32.totalorder %s5972_s9, %s5972_s9 }
  0x25   : > { %p5975_p10 = pnand %p5973_p9, %p5961_p13  ;;  %p5982_p8 = por %p5981_p4, %p5980_p1 }
  0x27   : > { %p5976_p6 = pneg %p5975_p10 }
  0x29   : > { %p5983_p2 = pnand %p5982_p8, %p5976_p6 }
  0x2b   : > { %5986 = shalt.err (!%p5983_p2)
}
  0x2c   : > { %s6138_s10 = smov 64   ;;  %s6139_s11 = smov 4  }
  0x2d   : > { %5787 = dma.hbm_to_vmem [thread:$0]  (!%p6228_p11), %s6999_s1, 9216, %s177_s26, [#allocation7], %s6138_s10, %s6138_s10, %s6139_s11  }
  0x2e   : > { %p45_p1 = scmp.ge.s32.totalorder %s43_s28, 2  ;;  %s52_s25 = sadd.s32 1, %s6123_s14 }
  0x2f   : > { %p59_p2 = scmp.ne.s32.totalorder %s6123_s14, %s6119_s13  ;;  %p60_p4 = scmp.eq.s32.totalorder %s6135_s17, 0 }
  0x30   : > { %s7030_s28 = smov (%p45_p1, %s43_s28), 0  ;;  %p7012_p8 = scmp.ne.s32.totalorder %s7007_s21, 0 }
  0x31   : > { %p61_p6 = por %p60_p4, %p59_p2  ;;  %s47_s27 = ssub.s32 %s6131_s16, %s7030_s28 }
  0x32   : > { %p6260_p10 = por %p7012_p8, %p59_p2  ;;  %p5800_p12 = scmp.lt.s32.totalorder %s6135_s17, 2 }
  0x33   : > { %p50_p13 = scmp.eq.s32.totalorder %s47_s27, 0  ;;  %s190_s30 = sand.u32 1, %s6123_s14  }
  0x34   : > { %s5771_s4 = smul.u32 240, %s190_s30  ;;  %p6272_p11 = pnand %p5800_p12, %p61_p6 }
  0x35   : > { %s6269_s5 = scalar_select %p50_p13, %s6123_s14, %s52_s25  }
  0x36   : > { %s5772_s26 = smul.u32 3840, %s6131_s16  ;;  %s194_s6 = scalar_lea.vmem [#allocation3], %s5771_s4 }
  0x37   : > { %s202_s7 = sshll.u32 %s194_s6, 4  ;;  %s6283_s19 = scalar_lea.sflag [#allocation4], %s190_s30  ;;  %s6281_s7 = int_to_ptr.vmem [resolvable:$true] %s202_s7 }
  0x38   : > { %s6279_s18 = scalar_lea.hbm %s6998_s0, %s5772_s26  ;;  %p5989_p3 = pneg %p6272_p11 }
  0x39   : > { %s5987_s25 = scalar_lea.hbm %s6279_s18, 3840  ;;  %s5992_s26 = scalar_lea.hbm %s6998_s0, 7680 }
  0x3a   : > { %p5988_p0 = scmp.ne.s32.totalorder %s6279_s18, %s5987_s25  ;;  %p5993_p9 = scmp.lt.u32.totalorder %s6279_s18, %s6998_s0 }
  0x3b   : > { %p5994_p1 = scmp.lt.u32.totalorder %s5992_s26, %s5987_s25  ;;  %p5996_p4 = scmp.lt.u32.totalorder %s5987_s25, %s6279_s18 }
  0x3c   : > { %p5990_p5 = pnand %p5989_p3, %p5988_p0 }
  0x3d   : > { %p5995_p2 = por %p5994_p1, %p5993_p9 }
  0x3e   : > { %p5991_p7 = pneg %p5990_p5 }
  0x3f   : > { %p5997_p6 = por %p5996_p4, %p5995_p2 }
  0x41   : > { %p5998_p8 = pnand %p5997_p6, %p5991_p7 }
  0x43   : > { %6001 = shalt.err (!%p5998_p8)
}
  0x44   : > { %s6002_s30 = scalar_lea.vmem %s6281_s7, 3840  ;;  %s6140_s21 = smov [#allocation3]  }
  0x45   : > { %p6003_p12 = scmp.ne.s32.totalorder %s6281_s7, %s6002_s30  ;;  %s6007_s27 = sshll.u32 %s6140_s21, 4  ;;  %s6008_s27 = int_to_ptr.vmem [resolvable:$false] %s6007_s27 }
  0x46   : > { %s6009_s4 = scalar_lea.vmem %s6008_s27, 7680  ;;  %p6010_p5 = scmp.lt.s32.totalorder %s6281_s7, %s6008_s27 }
  0x47   : > { %p6005_p13 = pnand %p6003_p12, %p5989_p3  ;;  %p6011_p9 = scmp.lt.s32.totalorder %s6009_s4, %s6002_s30 }
  0x49   : > { %p6006_p0 = pneg %p6005_p13  ;;  %p6012_p1 = por %p6011_p9, %p6010_p5 }
  0x4b   : > { %p6013_p2 = pnand %p6012_p1, %p6006_p0 }
  0x4d   : > { %6016 = shalt.err (!%p6013_p2)
}
  0x4e   : > { %5791 = dma.hbm_to_vmem [thread:$0]  (!%p6272_p11), %s6279_s18, 3840, %s6281_s7, %s6283_s19, %s6138_s10, %s6138_s10, %s6139_s11  }
  0x4f   : > { %p7015_p3 = scmp.ne.s32.totalorder %s7010_s24, 0 }
  0x50   : > { %s6317_s25 = sand.u32 (!%p7015_p3), 1, %s6119_s13   ;;  %p7016_p7 = scmp.ne.s32.totalorder (!%p7015_p3), %s7008_s22, 0 }
  0x51   : > { %214 = sbr.rel (%p7015_p3) target bundleno = 669 (0x29d), region = 28  ;;  %s217_s6 = scalar_lea.sflag (!%p7015_p3), [#allocation4], %s6317_s25 }
  0x52   : > { %s5773_s26 = smul.u32 (!%p7015_p3), 240, %s6317_s25 }
  0x54   : > { %s6321_s9 = scalar_lea.vmem (!%p7015_p3), [#allocation3], %s5773_s26 }
  0x58   : > { %6098 = dma.done.wait (%p7016_p7), %s217_s6, 3840  }
  0x59   : > { %6100 = vsyncadd (%p7016_p7), %s217_s6, 4294963456  ;;  %p7017_p11 = scmp.ne.s32.totalorder %s7006_s20, 0 }
  0x5b   : > { %6102 = dma.done.wait (%p7017_p11), [#allocation7], 9216  }
  0x5c   : > { %6104 = vsyncadd (%p7017_p11), [#allocation7], 4294958080  ;;  %v5856_v0 = vld [vmem:[#allocation6] sm:$0xff]   ;;  %v5858_v2 = vld [vmem:[#allocation6 + $0x8] sm:$0xff]   ;;  %vm1537_vm0 = vcmask 1042432   ;;  %vm1538_vm1 = vcmask 1046532  }
  0x5d   : > { %v5857_v1 = vld [vmem:[#allocation6 + $0x100] sm:$0xff]   ;;  %5067 = vmatprep.subr.bf16.mxu1 %v5856_v0  ;;  %v5859_v3 = vld [vmem:[#allocation6 + $0x108] sm:$0xff]   ;;  %v5860_v4 = vld [vmem:[#allocation6 + $0x10] sm:$0xff]   ;;  %vm2843_vm3 = vcmask 1041408   ;;  %vm2844_vm4 = vcmask 1045508   ;;  %s4510_s20 = sshll.u32 %s6317_s25, 7 }
  0x5e   : > { %5259 = vmatprep.subr.bf16.mxu0 %v5857_v1  ;;  %5068 = vmatpush3.bf16.msra.mxu1 %v5856_v0  ;;  %v5861_v5 = vld [vmem:[#allocation6 + $0x110] sm:$0xff]   ;;  %v5862_v6 = vld [vmem:[#allocation6 + $0x18] sm:$0xff]   ;;  %vm6331_vm2 = vmor %vm1537_vm0, %vm1538_vm1  ;;  %s6889_s22 = scalar_lea.vmem [#allocation8], %s4510_s20  ;;  %s4755_s24 = sshll.u32 %s6127_s15, 11 }
  0x5f   : > { %5260 = vmatpush3.bf16.msra.mxu0 %v5857_v1  ;;  %5069 = vmatprep.subr.bf16.mxu1 %v5858_v2  ;;  %v5863_v7 = vld [vmem:[#allocation6 + $0x118] sm:$0xff]   ;;  %v5864_v9 = vld [vmem:[#allocation6 + $0x20] sm:$0xff]   ;;  %v5866_v11 = vld [vmem:[#allocation6 + $0x28] sm:$0xff]   ;;  %s4353_s10 = sshll.u32 %s6889_s22, 4  ;;  %s6914_s8 = scalar_lea.hbm %s7000_s2, %s4755_s24  ;;  %s6916_s10 = int_to_ptr.vmem [resolvable:$true] %s4353_s10 }
  0x60   : > { %5261 = vmatprep.subr.bf16.mxu0 %v5859_v3  ;;  %v5865_v10 = vld [vmem:[#allocation6 + $0x120] sm:$0xff]   ;;  %v5867_v12 = vld [vmem:[#allocation6 + $0x128] sm:$0xff]   ;;  %v5868_v20 = vld [vmem:[#allocation6 + $0x30] sm:$0xff]   ;;  %s4334_s18 = scalar_lea.sflag [#allocation5], %s6317_s25  ;;  %s6017_s19 = scalar_lea.vmem %s6916_s10, 2048 }
  0x61   : > { %v5872_v13 = vld [vmem:[%s6321_s9] sm:$0xff]   ;;  %v1423_v14 = vld [vmem:[%s6321_s9 + $0x18] sm:$0xe]  ;;  %v1424_v15 = vld [vmem:[%s6321_s9 + $0x1c] sm:$0xf]  ;;  %p6018_p4 = scmp.ne.s32.totalorder %s6916_s10, %s6017_s19  ;;  %s6141_s30 = smov [#allocation8]  }
  0x62   : > { %5070 = vmatpush3.bf16.msra.mxu1 %v5858_v2  ;;  %v1425_v16 = vld [vmem:[%s6321_s9 + $0x20] sm:$0x1]  ;;  %5083 = vmatprep.mubr.bf16.mxu1 %v5872_v13  ;;  %v4558_v17 = vrot.slane %v1423_v14, 9  ;;  %v1556_v18 = vrot.slane %v1424_v15, 5  ;;  %v1426_v23 = vld [vmem:[%s6321_s9 + $0x24] sm:$0xe]  ;;  %vm6586_vm5 = vmor %vm2843_vm3, %vm2844_vm4 }
  0x63   : > { %5262 = vmatpush3.bf16.msra.mxu0 %v5859_v3  ;;  %5071 = vmatprep.subr.bf16.mxu1 %v5860_v4  ;;  %v1559_v19 = vrot.slane %v1425_v16, 5  ;;  %v1427_v24 = vld [vmem:[%s6321_s9 + $0x28] sm:$0xf]  ;;  %v5869_v25 = vld [vmem:[#allocation6 + $0x130] sm:$0xff]   ;;  %v1428_v26 = vld [vmem:[%s6321_s9 + $0x2c] sm:$0x1]  ;;  %p6019_p6 = pnand %p6018_p4, %p6260_p10 }
  0x64   : > { %5263 = vmatprep.subr.bf16.mxu0 %v5861_v5  ;;  %v1557_v21 = vsel %vm6331_vm2, %v4558_v17, %v1556_v18  ;;  %v1558_v22 = vrot.slane %v1556_v18, 4  ;;  %v1563_v27 = vrot.slane %v1427_v24, 5  ;;  %v5870_v29 = vld [vmem:[#allocation6 + $0x38] sm:$0xff]   ;;  %v4559_v31 = vrot.slane %v1426_v23, 9  ;;  %v1429_v34 = vld [vmem:[%s6321_s9 + $0x30] sm:$0xe] }
  0x65   : > { %v1566_v33 = vrot.slane %v1428_v26, 5  ;;  %v5871_v35 = vld [vmem:[#allocation6 + $0x138] sm:$0xff]   ;;  %v1430_v36 = vld [vmem:[%s6321_s9 + $0x34] sm:$0xf]  ;;  %v4560_v38 = vrot.slane %v1429_v34, 9  ;;  %v5876_v56 = vld [vmem:[#allocation6 + $0x1c8] sm:$0xff]   ;;  %p6020_p8 = pneg %p6019_p6 }
  0x66   : > { %5072 = vmatpush3.bf16.msra.mxu1 %v5860_v4  ;;  %v1560_v28 = vsel %vm6331_vm2, %v1558_v22, %v1559_v19  ;;  %v1565_v32 = vrot.slane %v1563_v27, 4  ;;  %v1431_v37 = vld [vmem:[%s6321_s9 + $0x38] sm:$0x1]  ;;  %v1570_v39 = vrot.slane %v1430_v36, 5  ;;  %v5873_v41 = vld [vmem:[%s6321_s9 + $0xc] sm:$0xff]   ;;  %v1564_v43 = vsel %vm6331_vm2, %v4559_v31, %v1563_v27  ;;  %s6021_s21 = sshll.u32 %s6141_s30, 4  ;;  %s6022_s21 = int_to_ptr.vmem [resolvable:$false] %s6021_s21 }
  0x67   : > { %5264 = vmatpush3.bf16.msra.mxu0 %v5861_v5  ;;  %5073 = vmatprep.subr.bf16.mxu1 %v5862_v6  ;;  %v6346_v30 = vcombine.low %v1557_v21, %v1560_v28  ;;  %v1573_v40 = vrot.slane %v1431_v37, 5  ;;  %v5874_v42 = vld [vmem:[#allocation6 + $0xc0] sm:$0xff]   ;;  %v1432_v46 = vld [vmem:[%s6321_s9 + $0x3c] sm:$0xe]  ;;  %v1435_v59 = vld [vmem:[%s6321_s9 + $0x48] sm:$0xe]  ;;  %p6024_p12 = scmp.lt.s32.totalorder %s6916_s10, %s6022_s21 }
  0x68   : > { %5265 = vmatprep.subr.bf16.mxu0 %v5863_v7  ;;  %v1567_v44 = vsel %vm6331_vm2, %v1565_v32, %v1566_v33  ;;  %v1572_v45 = vrot.slane %v1570_v39, 4  ;;  %v1433_v47 = vld [vmem:[%s6321_s9 + $0x40] sm:$0xf]  ;;  %v1434_v49 = vld [vmem:[%s6321_s9 + $0x44] sm:$0x1]  ;;  %v6361_v51 = vld [vmem:[%s6321_s9 + $0x18] sm:$0xff]   ;;  %v1571_v52 = vsel %vm6331_vm2, %v4560_v38, %v1570_v39 }
  0x69   : > { %5275 = vmatprep.mubr.bf16.mxu0 %v6346_v30  ;;  %v5875_v48 = vld [vmem:[#allocation6 + $0x1c0] sm:$0xff]   ;;  %v1577_v50 = vrot.slane %v1433_v47, 5  ;;  %v4561_v54 = vrot.slane %v1432_v46, 9  ;;  %v6367_v55 = vcombine.low %v1564_v43, %v1567_v44  ;;  %v1580_v58 = vrot.slane %v1434_v49, 5  ;;  %v1436_v60 = vld [vmem:[%s6321_s9 + $0x4c] sm:$0xf] }
  0x6a   : > { %5074 = vmatpush3.bf16.msra.mxu1 %v5862_v6  ;;  %v1574_v53 = vsel %vm6331_vm2, %v1572_v45, %v1573_v40  ;;  %v1437_v62 = vld [vmem:[%s6321_s9 + $0x50] sm:$0x1]  ;;  %v4562_v63 = vrot.slane %v1435_v59, 9  ;;  %v1584_v0 = vrot.slane %v1436_v60, 5  ;;  %v5879_v1 = vld [vmem:[#allocation6 + $0xc8] sm:$0xff]   ;;  %v5889_v31 = vld [vmem:[#allocation6 + $0xd8] sm:$0xff]  }
  0x6b   : > { %5266 = vmatpush3.bf16.msra.mxu0 %v5863_v7  ;;  %5075 = vmatprep.subr.bf16.mxu1 %v5864_v9  ;;  %v1579_v57 = vrot.slane %v1577_v50, 4  ;;  %v6371_v61 = vcombine.low %v1571_v52, %v1574_v53  ;;  %v1587_v2 = vrot.slane %v1437_v62, 5  ;;  %v1438_v4 = vld [vmem:[%s6321_s9 + $0x54] sm:$0xe]  ;;  %v6378_v5 = vld [vmem:[%s6321_s9 + $0x24] sm:$0xff]   ;;  %v1578_v6 = vsel %vm6331_vm2, %v4561_v54, %v1577_v50  ;;  %v6447_v62 = vld [vmem:[%s6321_s9 + $0x6c] sm:$0xff]  }
  0x6c   : > { %5267 = vmatprep.subr.bf16.mxu0 %v5865_v10  ;;  %v1586_v3 = vrot.slane %v1584_v0, 4  ;;  %v1585_v13 = vsel %vm6331_vm2, %v4562_v63, %v1584_v0  ;;  %v6392_v16 = vld [vmem:[%s6321_s9 + $0x30] sm:$0xff]   ;;  %v4563_v17 = vrot.slane %v1438_v4, 9  ;;  %v1441_v22 = vld [vmem:[%s6321_s9 + $0x60] sm:$0xe]  ;;  %v5886_v43 = vld [vmem:[#allocation6 + $0x1e8] sm:$0xff]  }
  0x6d   : > { %v1581_v7 = vsel %vm6331_vm2, %v1579_v57, %v1580_v58  ;;  %v1442_v23 = vld [vmem:[%s6321_s9 + $0x64] sm:$0xf]  ;;  %v1443_v24 = vld [vmem:[%s6321_s9 + $0x68] sm:$0x1]  ;;  %v4564_v26 = vrot.slane %v1441_v22, 9  ;;  %s6023_s27 = scalar_lea.vmem %s6022_s21, 4096 }
  0x6e   : > { %5076 = vmatpush3.bf16.msra.mxu1 %v5864_v9  ;;  %v5884_v9 = vld [vmem:[#allocation6 + $0xd0] sm:$0xff]   ;;  %v1588_v14 = vsel %vm6331_vm2, %v1586_v3, %v1587_v2  ;;  %v6394_v18 = vcombine.low %v1578_v6, %v1581_v7  ;;  %v1598_v27 = vrot.slane %v1442_v23, 5  ;;  %v1601_v28 = vrot.slane %v1443_v24, 5  ;;  %v1444_v36 = vld [vmem:[%s6321_s9 + $0x6c] sm:$0xe]  ;;  %v5894_v49 = vld [vmem:[#allocation6 + $0xe0] sm:$0xff]   ;;  %p6025_p13 = scmp.lt.s32.totalorder %s6023_s27, %s6017_s19 }
  0x6f   : > { %5268 = vmatpush3.bf16.msra.mxu0 %v5865_v10  ;;  %5077 = vmatprep.subr.bf16.mxu1 %v5866_v11  ;;  %v1439_v10 = vld [vmem:[%s6321_s9 + $0x58] sm:$0xf]  ;;  %v6396_v21 = vcombine.low %v1585_v13, %v1588_v14  ;;  %v1445_v32 = vld [vmem:[%s6321_s9 + $0x70] sm:$0xf]  ;;  %v1446_v40 = vld [vmem:[%s6321_s9 + $0x74] sm:$0x1] }
  0x70   : > { %5269 = vmatprep.subr.bf16.mxu0 %v5867_v12  ;;  %v1591_v15 = vrot.slane %v1439_v10, 5  ;;  %v1605_v37 = vrot.slane %v1445_v32, 5  ;;  %v1599_v38 = vsel %vm6331_vm2, %v4564_v26, %v1598_v27  ;;  %v6422_v44 = vld [vmem:[%s6321_s9 + $0x48] sm:$0xff]   ;;  %v4565_v45 = vrot.slane %v1444_v36, 9  ;;  %v5890_v53 = vld [vmem:[#allocation6 + $0x1f0] sm:$0xff]   ;;  %v5895_v63 = vld [vmem:[#allocation6 + $0x80] sm:$0xff]   ;;  %p6026_p0 = por %p6025_p13, %p6024_p12 }
  0x71   : > { %v5898_v54 = vld [vmem:[#allocation6 + $0xe8] sm:$0xff]   ;;  %v6440_v58 = vld [vmem:[%s6321_s9 + $0x60] sm:$0xff]   ;;  %v5891_v59 = vld [vmem:[#allocation6 + $0x1f8] sm:$0xff]  }
  0x72   : > { %5078 = vmatpush3.bf16.msra.mxu1 %v5866_v11  ;;  %v1440_v11 = vld [vmem:[%s6321_s9 + $0x5c] sm:$0x1]  ;;  %v1593_v19 = vrot.slane %v1591_v15, 4  ;;  %v1592_v33 = vsel %vm6331_vm2, %v4563_v17, %v1591_v15  ;;  %v1607_v47 = vrot.slane %v1605_v37, 4  ;;  %v1606_v50 = vsel %vm6331_vm2, %v4565_v45, %v1605_v37  ;;  %v5902_v60 = vld [vmem:[#allocation6 + $0xf0] sm:$0xff]   ;;  %v6454_v4 = vld [vmem:[#allocation6 + $0x180] sm:$0xff]   ;;  %p6027_p5 = pnand %p6026_p0, %p6020_p8 }
  0x73   : > { %5270 = vmatpush3.bf16.msra.mxu0 %v5867_v12  ;;  %5079 = vmatprep.subr.bf16.mxu1 %v5868_v20  ;;  %v5880_v12 = vld [vmem:[#allocation6 + $0x1d0] sm:$0xff]   ;;  %v5906_v0 = vld [vmem:[#allocation6 + $0xf8] sm:$0xff]   ;;  %v5899_v2 = vld [vmem:[#allocation6 + $0x88] sm:$0xff]  }
  0x74   : > { %5271 = vmatprep.subr.bf16.mxu0 %v5869_v25  ;;  %v1448_v3 = vld [vmem:[%s6321_s9 + $0x7c] sm:$0xf]  ;;  %v5903_v6 = vld [vmem:[#allocation6 + $0x90] sm:$0xff]   ;;  %v1447_v10 = vld [vmem:[%s6321_s9 + $0x78] sm:$0xe] }
  0x75   : > { %v1612_v7 = vrot.slane %v1448_v3, 5  ;;  %v4566_v13 = vrot.slane %v1447_v10, 9  ;;  %v1451_v17 = vld [vmem:[%s6321_s9 + $0x88] sm:$0xf]  ;;  %v1450_v22 = vld [vmem:[%s6321_s9 + $0x84] sm:$0xe] }
  0x76   : > { %5080 = vmatpush3.bf16.msra.mxu1 %v5868_v20  ;;  %v1594_v20 = vrot.slane %v1440_v11, 5  ;;  %v1449_v11 = vld [vmem:[%s6321_s9 + $0x80] sm:$0x1]  ;;  %v1452_v23 = vld [vmem:[%s6321_s9 + $0x8c] sm:$0x1]  ;;  %v1619_v24 = vrot.slane %v1451_v17, 5 }
  0x77   : > { %5272 = vmatpush3.bf16.msra.mxu0 %v5869_v25  ;;  %5081 = vmatprep.subr.bf16.mxu1 %v5870_v29  ;;  %v5881_v25 = vld [vmem:[#allocation6 + $0x1d8] sm:$0xff]   ;;  %v1614_v14 = vrot.slane %v1612_v7, 4  ;;  %v1615_v15 = vrot.slane %v1449_v11, 5  ;;  %v1622_v37 = vrot.slane %v1452_v23, 5  ;;  %v5911_v45 = vld [vmem:[#allocation6 + $0xa8] sm:$0xff]  }
  0x78   : > { %5273 = vmatprep.subr.bf16.mxu0 %v5871_v35  ;;  %v1595_v34 = vsel %vm6331_vm2, %v1593_v19, %v1594_v20  ;;  %v5907_v19 = vld [vmem:[#allocation6 + $0x98] sm:$0xff]   ;;  %v1454_v20 = vld [vmem:[%s6321_s9 + $0x94] sm:$0xf]  ;;  %v1621_v36 = vrot.slane %v1619_v24, 4  ;;  %v5952_v8 = vld [vmem:[#allocation6 + $0x108] sm:$0xff]  }
  0x79   : > { %v1616_v26 = vsel %vm6331_vm2, %v1614_v14, %v1615_v15  ;;  %v1455_v32 = vld [vmem:[%s6321_s9 + $0x98] sm:$0x1]  ;;  %v1462_v23 = vld [vmem:[%s6321_s9 + $0xb4] sm:$0xe] }
  0x7a   : > { %5082 = vmatpush3.bf16.msra.mxu1 %v5870_v29  ;;  %v1600_v29 = vrot.slane %v1598_v27, 4  ;;  %v1626_v27 = vrot.slane %v1454_v20, 5  ;;  %v6509_v3 = vld [vmem:[%s6321_s9 + $0xb4] sm:$0xff]  }
  0x7b   : > { %5274 = vmatpush3.bf16.msra.mxu0 %v5871_v35  ;;  %5115 = vmatprep.subr.bf16.mxu1 %v5874_v42  ;;  %v5885_v35 = vld [vmem:[#allocation6 + $0x1e0] sm:$0xff]   ;;  %v5915_v20 = vld [vmem:[#allocation6 + $0xb8] sm:$0xff]  }
  0x7c   : > { %5307 = vmatprep.subr.bf16.mxu0 %v5875_v48  ;;  %v1602_v39 = vsel %vm6331_vm2, %v1600_v29, %v1601_v28  ;;  %v5909_v28 = vld [vmem:[#allocation6 + $0xa0] sm:$0xff]  }
  0x7d   : > { %5084 = vmatmul.mubr.bf16.vlgmr.msra.gmra.mrb[0].mxu1 %v5873_v41  ;;  %v6417_v41 = vld [vmem:[%s6321_s9 + $0x3c] sm:$0xff]   ;;  %v6424_v46 = vcombine.low %v1599_v38, %v1602_v39  ;;  %v1628_v39 = vrot.slane %v1626_v27, 4 }
  0x7e   : > { %5276 = vmatmul.mubr.bf16.vlgmr.msra.gmra.mrb[0].mxu0 %v6367_v55  ;;  %5116 = vmatpush3.bf16.msra.mxu1 %v5874_v42  ;;  %v6419_v42 = vcombine.low %v1592_v33, %v1595_v34  ;;  %v6481_v29 = vld [vmem:[%s6321_s9 + $0x9c] sm:$0xff]   ;;  %v6486_v33 = vld [vmem:[%s6321_s9 + $0xa8] sm:$0xff]  }
  0x7f   : > { %5308 = vmatpush3.bf16.msra.mxu0 %v5875_v48  ;;  %5087 = vmatprep.mubr.bf16.mxu1 %v6361_v51  ;;  %v1608_v48 = vrot.slane %v1446_v40, 5  ;;  %v1629_v40 = vrot.slane %v1455_v32, 5 }
  0x80   : > { %5309 = vmatprep.subr.bf16.mxu0 %v5876_v56  ;;  %5279 = vmatprep.mubr.bf16.mxu0 %v6371_v61 }
  0x81   : > { %5117 = vmatprep.subr.bf16.mxu1 %v5879_v1  ;;  %v1609_v52 = vsel %vm6331_vm2, %v1607_v47, %v1608_v48  ;;  %v1460_v47 = vld [vmem:[%s6321_s9 + $0xac] sm:$0xf]  ;;  %v1456_v48 = vld [vmem:[%s6321_s9 + $0x9c] sm:$0xe] }
  0x82   : > { %5118 = vmatpush3.bf16.msra.mxu1 %v5879_v1  ;;  %v6437_v57 = vcombine.low %v1606_v50, %v1609_v52  ;;  %v6450_v1 = vld [vmem:[%s6321_s9 + $0x78] sm:$0xff]   ;;  %v1623_v52 = vsel %vm6331_vm2, %v1621_v36, %v1622_v37  ;;  %v1467_v36 = vld [vmem:[%s6321_s9 + $0xc8] sm:$0x1] }
  0x83   : > { %5310 = vmatpush3.bf16.msra.mxu0 %v5876_v56  ;;  %5119 = vmatprep.subr.bf16.mxu1 %v5884_v9  ;;  %v6435_v56 = vld [vmem:[%s6321_s9 + $0x54] sm:$0xff]  }
  0x84   : > { %5311 = vmatprep.subr.bf16.mxu0 %v5880_v12 }
  0x85   : > { %5088 = vmatmul.mubr.bf16.gmra.mrb[4].mxu1 %v6378_v5 }
  0x86   : > { %5280 = vmatmul.mubr.bf16.gmra.mrb[4].mxu0 %v6394_v18  ;;  %5091 = vmatprep.mubr.bf16.mxu1 %v6392_v16 }
  0x87   : > { %5312 = vmatpush3.bf16.msra.mxu0 %v5880_v12  ;;  %5283 = vmatprep.mubr.bf16.mxu0 %v6396_v21  ;;  %v6466_v12 = vld [vmem:[%s6321_s9 + $0x90] sm:$0xff]  }
  0x88   : > { %5313 = vmatprep.subr.bf16.mxu0 %v5881_v25  ;;  %5120 = vmatpush3.bf16.msra.mxu1 %v5884_v9  ;;  %v6460_v9 = vld [vmem:[%s6321_s9 + $0x84] sm:$0xff]  }
  0x89   : > { %5121 = vmatprep.subr.bf16.mxu1 %v5889_v31 }
  0x8b   : > { %5314 = vmatpush3.bf16.msra.mxu0 %v5881_v25  ;;  %v1613_v25 = vsel %vm6331_vm2, %v4566_v13, %v1612_v7  ;;  %v4569_v7 = vrot.slane %v1456_v48, 9  ;;  %v1469_v48 = vld [vmem:[%s6321_s9 + $0xd0] sm:$0xf] }
  0x8c   : > { %5315 = vmatprep.subr.bf16.mxu0 %v5885_v35  ;;  %5122 = vmatpush3.bf16.msra.mxu1 %v5889_v31  ;;  %v1453_v31 = vld [vmem:[%s6321_s9 + $0x90] sm:$0xe]  ;;  %v6488_v34 = vcombine.low %v1613_v25, %v1616_v26 }
  0x8d   : > { %5092 = vmatmul.mubr.bf16.gmra.mrb[8].mxu1 %v6417_v41  ;;  %5123 = vmatprep.subr.bf16.mxu1 %v5894_v49  ;;  %v4568_v38 = vrot.slane %v1453_v31, 9  ;;  %v1464_v31 = vld [vmem:[%s6321_s9 + $0xbc] sm:$0x1] }
  0x8e   : > { %5284 = vmatmul.mubr.bf16.gmra.mrb[8].mxu0 %v6419_v42  ;;  %5095 = vmatprep.mubr.bf16.mxu1 %v6422_v44 }
  0x8f   : > { %5316 = vmatpush3.bf16.msra.mxu0 %v5885_v35  ;;  %5287 = vmatprep.mubr.bf16.mxu0 %v6424_v46  ;;  %v4567_v35 = vrot.slane %v1450_v22, 9  ;;  %v1466_v22 = vld [vmem:[%s6321_s9 + $0xc4] sm:$0xf] }
  0x90   : > { %5317 = vmatprep.subr.bf16.mxu0 %v5886_v43  ;;  %5124 = vmatpush3.bf16.msra.mxu1 %v5894_v49  ;;  %v1458_v49 = vld [vmem:[%s6321_s9 + $0xa4] sm:$0x1]  ;;  %v1654_v32 = vrot.slane %v1466_v22, 5 }
  0x91   : > { %5125 = vmatprep.subr.bf16.mxu1 %v5898_v54  ;;  %v1620_v50 = vsel %vm6331_vm2, %v4567_v35, %v1619_v24  ;;  %v1636_v10 = vrot.slane %v1458_v49, 5  ;;  %v6532_v35 = vld [vmem:[#allocation6 + $0x140] sm:$0xff]  }
  0x92   : > { %v1656_v49 = vrot.slane %v1654_v32, 4 }
  0x93   : > { %5318 = vmatpush3.bf16.msra.mxu0 %v5886_v43  ;;  %v1457_v43 = vld [vmem:[%s6321_s9 + $0xa0] sm:$0xf] }
  0x94   : > { %5319 = vmatprep.subr.bf16.mxu0 %v5890_v53  ;;  %5126 = vmatpush3.bf16.msra.mxu1 %v5898_v54  ;;  %v1459_v54 = vld [vmem:[%s6321_s9 + $0xa8] sm:$0xe] }
  0x95   : > { %5096 = vmatmul.mubr.bf16.gmra.mrb[12].mxu1 %v6435_v56  ;;  %5127 = vmatprep.subr.bf16.mxu1 %v5902_v60  ;;  %v4570_v14 = vrot.slane %v1459_v54, 9 }
  0x96   : > { %5288 = vmatmul.mubr.bf16.gmra.mrb[12].mxu0 %v6437_v57  ;;  %5099 = vmatprep.mubr.bf16.mxu1 %v6440_v58 }
  0x97   : > { %5320 = vmatpush3.bf16.msra.mxu0 %v5890_v53  ;;  %5323 = vmatprep.mubr.bf16.mxu0 %v6371_v61  ;;  %v1633_v53 = vrot.slane %v1457_v43, 5 }
  0x98   : > { %5321 = vmatprep.subr.bf16.mxu0 %v5891_v59  ;;  %5128 = vmatpush3.bf16.msra.mxu1 %v5902_v60  ;;  %v1630_v60 = vsel %vm6331_vm2, %v1628_v39, %v1629_v40  ;;  %v5910_v40 = vld [vmem:[#allocation6 + $0x188] sm:$0xff]  }
  0x99   : > { %5129 = vmatprep.subr.bf16.mxu1 %v5906_v0  ;;  %v1635_v13 = vrot.slane %v1633_v53, 4  ;;  %v1634_v24 = vsel %vm6331_vm2, %v4569_v7, %v1633_v53  ;;  %v1468_v53 = vld [vmem:[%s6321_s9 + $0xcc] sm:$0xe]  ;;  %v1473_v7 = vld [vmem:[%s6321_s9 + $0xe0] sm:$0x1] }
  0x9a   : > { %v1671_v22 = vrot.slane %v1473_v7, 5  ;;  %v2729_v7 = vld [vmem:[%s6321_s9 + $0x18] sm:$0xc] }
  0x9b   : > { %5322 = vmatpush3.bf16.msra.mxu0 %v5891_v59  ;;  %v1627_v59 = vsel %vm6331_vm2, %v4568_v38, %v1626_v27  ;;  %v1637_v25 = vsel %vm6331_vm2, %v1635_v13, %v1636_v10  ;;  %v4571_v38 = vrot.slane %v1462_v23, 9  ;;  %v4573_v13 = vrot.slane %v1468_v53, 9  ;;  %v5914_v23 = vld [vmem:[#allocation6 + $0x198] sm:$0xff]  }
  0x9c   : > { %5355 = vmatprep.subr.bf16.mxu0 %v5895_v63  ;;  %5130 = vmatpush3.bf16.msra.mxu1 %v5906_v0  ;;  %v1640_v0 = vrot.slane %v1460_v47, 5  ;;  %v6513_v11 = vcombine.low %v1627_v59, %v1630_v60  ;;  %v6535_v37 = vcombine.low %v1634_v24, %v1637_v25  ;;  %v5912_v60 = vld [vmem:[#allocation6 + $0x190] sm:$0xff]   ;;  %v1475_v24 = vld [vmem:[%s6321_s9 + $0xe8] sm:$0xf] }
  0x9d   : > { %5100 = vmatmul.mubr.bf16.gmra.mrb[16].mxu1 %v6447_v62  ;;  %5163 = vmatprep.subr.bf16.mxu1 %v6454_v4  ;;  %v2724_v25 = vld [vmem:[%s6321_s9 + $0x4] sm:$0xf] }
  0x9e   : > { %5324 = vmatmul.mubr.bf16.vlgmr.msra.gmra.mrb[0].mxu0 %v6394_v18  ;;  %5103 = vmatprep.mubr.bf16.mxu1 %v6450_v1  ;;  %v1642_v17 = vrot.slane %v1640_v0, 4  ;;  %v1641_v27 = vsel %vm6331_vm2, %v4570_v14, %v1640_v0  ;;  %v1470_v0 = vld [vmem:[%s6321_s9 + $0xd4] sm:$0x1] }
  0x9f   : > { %5356 = vmatpush3.bf16.msra.mxu0 %v5895_v63  ;;  %5327 = vmatprep.mubr.bf16.mxu0 %v6396_v21  ;;  %v1461_v63 = vld [vmem:[%s6321_s9 + $0xb0] sm:$0x1] }
  0xa0   : > { %5357 = vmatprep.subr.bf16.mxu0 %v5899_v2  ;;  %v1643_v15 = vrot.slane %v1461_v63, 5 }
  0xa3   : > { %5358 = vmatpush3.bf16.msra.mxu0 %v5899_v2  ;;  %v5913_v2 = vld [vmem:[#allocation6 + $0xb0] sm:$0xff]  }
  0xa4   : > { %5359 = vmatprep.subr.bf16.mxu0 %v5903_v6 }
  0xa5   : > { %5104 = vmatmul.mubr.bf16.gmra.mrb[20].mxu1 %v6460_v9 }
  0xa6   : > { %5328 = vmatmul.mubr.bf16.gmra.mrb[4].mxu0 %v6419_v42  ;;  %5107 = vmatprep.mubr.bf16.mxu1 %v6466_v12 }
  0xa7   : > { %5331 = vmatprep.mubr.bf16.mxu0 %v6424_v46  ;;  %5360 = vmatpush3.bf16.msra.mxu0 %v5903_v6  ;;  %v6511_v6 = vcombine.low %v1620_v50, %v1623_v52  ;;  %v1657_v50 = vrot.slane %v1467_v36, 5  ;;  %v1472_v52 = vld [vmem:[%s6321_s9 + $0xdc] sm:$0xf] }
  0xa8   : > { %5361 = vmatprep.subr.bf16.mxu0 %v5907_v19 }
  0xab   : > { %5362 = vmatpush3.bf16.msra.mxu0 %v5907_v19  ;;  %v1463_v19 = vld [vmem:[%s6321_s9 + $0xb8] sm:$0xf] }
  0xac   : > { %5363 = vmatprep.subr.bf16.mxu0 %v5909_v28  ;;  %v1647_v26 = vrot.slane %v1463_v19, 5 }
  0xad   : > { %5108 = vmatmul.mubr.bf16.gmra.mrb[24].mxu1 %v6481_v29 }
  0xae   : > { %5332 = vmatmul.mubr.bf16.gmra.mrb[8].mxu0 %v6437_v57  ;;  %5111 = vmatprep.mubr.bf16.mxu1 %v6486_v33  ;;  %v1649_v43 = vrot.slane %v1647_v26, 4  ;;  %v1648_v54 = vsel %vm6331_vm2, %v4571_v38, %v1647_v26  ;;  %v1474_v26 = vld [vmem:[%s6321_s9 + $0xe4] sm:$0xe]  ;;  %v2848_v38 = vrot.slane %v2724_v25, 6  ;;  %v2733_v25 = vld [vmem:[%s6321_s9 + $0x28] sm:$0xf] }
  0xaf   : > { %5335 = vmatprep.mubr.bf16.mxu0 %v6488_v34  ;;  %5364 = vmatpush3.bf16.msra.mxu0 %v5909_v28  ;;  %v1644_v28 = vsel %vm6331_vm2, %v1642_v17, %v1643_v15  ;;  %v1664_v17 = vrot.slane %v1470_v0, 5 }
  0xb0   : > { %5365 = vmatprep.subr.bf16.mxu0 %v5911_v45  ;;  %v6537_v39 = vcombine.low %v1641_v27, %v1644_v28  ;;  %v1476_v27 = vld [vmem:[%s6321_s9 + $0xec] sm:$0x1]  ;;  %v2850_v53 = vrot.slane %v2848_v38, 4 }
  0xb3   : > { %5366 = vmatpush3.bf16.msra.mxu0 %v5911_v45  ;;  %v1650_v45 = vrot.slane %v1464_v31, 5 }
  0xb4   : > { %5367 = vmatprep.subr.bf16.mxu0 %v5913_v2 }
  0xb5   : > { %5112 = vmatmul.mubr.bf16.gmra.mrb[28].mxu1 %v6509_v3  ;;  %v1651_v59 = vsel %vm6331_vm2, %v1649_v43, %v1650_v45  ;;  %v4575_v45 = vrot.slane %v1474_v26, 9 }
  0xb6   : > { %5336 = vmatmul.mubr.bf16.gmra.mrb[12].mxu0 %v6511_v6  ;;  %5131 = vmatprep.mubr.bf16.mxu1 %v6361_v51  ;;  %v1465_v51 = vld [vmem:[%s6321_s9 + $0xc0] sm:$0xe]  ;;  %v6559_v10 = vcombine.low %v1648_v54, %v1651_v59  ;;  %v2727_v54 = vld [vmem:[%s6321_s9 + $0x10] sm:$0xf]  ;;  %v5918_v59 = vld [vmem:[#allocation6 + $0x1a8] sm:$0xff]  }
  0xb7   : > { %5339 = vmatprep.mubr.bf16.mxu0 %v6513_v11  ;;  %5368 = vmatpush3.bf16.msra.mxu0 %v5913_v2  ;;  %v4572_v47 = vrot.slane %v1465_v51, 9  ;;  %v1471_v2 = vld [vmem:[%s6321_s9 + $0xd8] sm:$0xe]  ;;  %v1675_v51 = vrot.slane %v1475_v24, 5 }
  0xb8   : > { %5369 = vmatprep.subr.bf16.mxu0 %v5915_v20  ;;  %v4574_v19 = vrot.slane %v1471_v2, 9  ;;  %v2855_v2 = vrot.slane %v2727_v54, 6 }
  0xb9   : > { %v1655_v63 = vsel %vm6331_vm2, %v4572_v47, %v1654_v32  ;;  %v2723_v32 = vld [vmem:[%s6321_s9] sm:$0xc]  ;;  %v1678_v47 = vrot.slane %v1476_v27, 5  ;;  %v1676_v0 = vsel %vm6331_vm2, %v4575_v45, %v1675_v51 }
  0xba   : > { %v2857_v27 = vrot.slane %v2855_v2, 4 }
  0xbb   : > { %5370 = vmatpush3.bf16.msra.mxu0 %v5915_v20 }
  0xbc   : > { %5403 = vmatprep.subr.bf16.mxu0 %v6532_v35 }
  0xbd   : > { %5132 = vmatmul.mubr.bf16.vlgmr.msra.gmra.mrb[0].mxu1 %v6378_v5  ;;  %v1661_v5 = vrot.slane %v1469_v48, 5 }
  0xbe   : > { %5340 = vmatmul.mubr.bf16.gmra.mrb[16].mxu0 %v6535_v37  ;;  %5164 = vmatpush3.bf16.msra.mxu1 %v6454_v4  ;;  %v1658_v4 = vsel %vm6331_vm2, %v1656_v49, %v1657_v50  ;;  %v1677_v49 = vrot.slane %v1675_v51, 4  ;;  %v4620_v50 = vrot.slane %v2723_v32, 10  ;;  %v2736_v51 = vld [vmem:[%s6321_s9 + $0x34] sm:$0xf] }
  0xbf   : > { %5135 = vmatprep.mubr.bf16.mxu1 %v6392_v16  ;;  %5343 = vmatprep.mubr.bf16.mxu0 %v6537_v39  ;;  %v1668_v16 = vrot.slane %v1472_v52, 5  ;;  %v6561_v14 = vcombine.low %v1655_v63, %v1658_v4  ;;  %v1663_v15 = vrot.slane %v1661_v5, 4  ;;  %v1662_v28 = vsel %vm6331_vm2, %v4573_v13, %v1661_v5  ;;  %v2730_v5 = vld [vmem:[%s6321_s9 + $0x1c] sm:$0xf]  ;;  %v2726_v63 = vld [vmem:[%s6321_s9 + $0xc] sm:$0xc] }
  0xc0   : > { %5165 = vmatprep.subr.bf16.mxu1 %v5910_v40  ;;  %v2728_v4 = vld [vmem:[%s6321_s9 + $0x14] sm:$0x3]  ;;  %v2849_v13 = vsel %vm6586_vm5, %v4620_v50, %v2848_v38  ;;  %v2734_v38 = vld [vmem:[%s6321_s9 + $0x2c] sm:$0x3] }
  0xc1   : > { %v1670_v20 = vrot.slane %v1668_v16, 4  ;;  %v1665_v31 = vsel %vm6331_vm2, %v1663_v15, %v1664_v17  ;;  %v2731_v17 = vld [vmem:[%s6321_s9 + $0x20] sm:$0x3] }
  0xc2   : > { %5166 = vmatpush3.bf16.msra.mxu1 %v5910_v40  ;;  %v5916_v40 = vld [vmem:[#allocation6 + $0x1a0] sm:$0xff]   ;;  %v6581_v43 = vcombine.low %v1662_v28, %v1665_v31  ;;  %v4622_v28 = vrot.slane %v2729_v7, 10  ;;  %v2865_v31 = vrot.slane %v2731_v17, 6 }
  0xc3   : > { %5167 = vmatprep.subr.bf16.mxu1 %v5912_v60  ;;  %v1672_v36 = vsel %vm6331_vm2, %v1670_v20, %v1671_v22  ;;  %v5920_v20 = vld [vmem:[#allocation6 + $0x1b0] sm:$0xff]   ;;  %v4621_v22 = vrot.slane %v2726_v63, 10 }
  0xc4   : > { %v2740_v17 = vld [vmem:[%s6321_s9 + $0x44] sm:$0x3] }
  0xc5   : > { %5136 = vmatmul.mubr.bf16.gmra.mrb[4].mxu1 %v6417_v41  ;;  %v1669_v41 = vsel %vm6331_vm2, %v4574_v19, %v1668_v16  ;;  %v1679_v16 = vsel %vm6331_vm2, %v1677_v49, %v1678_v47  ;;  %v2862_v19 = vrot.slane %v2730_v5, 6  ;;  %v2856_v45 = vsel %vm6586_vm5, %v4621_v22, %v2855_v2  ;;  %v5921_v22 = vld [vmem:[#allocation6 + $0x150] sm:$0xff]  }
  0xc6   : > { %5344 = vmatmul.mubr.bf16.gmra.mrb[20].mxu0 %v6559_v10  ;;  %5139 = vmatprep.mubr.bf16.mxu1 %v6422_v44  ;;  %v2725_v44 = vld [vmem:[%s6321_s9 + $0x8] sm:$0x3]  ;;  %v4610_v48 = vcombine.low %v1669_v41, %v1672_v36  ;;  %v4611_v24 = vcombine.low %v1676_v0, %v1679_v16  ;;  %v2732_v36 = vld [vmem:[%s6321_s9 + $0x24] sm:$0xc]  ;;  %v2872_v5 = vrot.slane %v2734_v38, 6 }
  0xc7   : > { %5347 = vmatprep.mubr.bf16.mxu0 %v6561_v14  ;;  %5168 = vmatpush3.bf16.msra.mxu1 %v5912_v60  ;;  %v2851_v52 = vrot.slane %v2725_v44, 6  ;;  %v2864_v32 = vrot.slane %v2862_v19, 4  ;;  %v5924_v41 = vld [vmem:[#allocation6 + $0x1b8] sm:$0xff]   ;;  %v2869_v44 = vrot.slane %v2733_v25, 6  ;;  %v2863_v49 = vsel %vm6586_vm5, %v4622_v28, %v2862_v19  ;;  %v5919_v0 = vld [vmem:[#allocation6 + $0x148] sm:$0xff]  }
  0xc8   : > { %5169 = vmatprep.subr.bf16.mxu1 %v5914_v23  ;;  %v4623_v54 = vrot.slane %v2732_v36, 10  ;;  %v2739_v16 = vld [vmem:[%s6321_s9 + $0x40] sm:$0xf]  ;;  %v2742_v19 = vld [vmem:[%s6321_s9 + $0x4c] sm:$0xf] }
  0xc9   : > { %v2852_v15 = vsel %vm6586_vm5, %v2850_v53, %v2851_v52  ;;  %v2866_v50 = vsel %vm6586_vm5, %v2864_v32, %v2865_v31  ;;  %v2737_v52 = vld [vmem:[%s6321_s9 + $0x38] sm:$0x3]  ;;  %v6621_v53 = vld [vmem:[#allocation6 + $0x40] sm:$0xff]   ;;  %v2741_v25 = vld [vmem:[%s6321_s9 + $0x48] sm:$0xc] }
  0xca   : > { %v4640_v26 = vcombine.low %v2849_v13, %v2852_v15  ;;  %v6624_v2 = vcombine.low %v2863_v49, %v2866_v50  ;;  %v2879_v13 = vrot.slane %v2737_v52, 6  ;;  %v2738_v15 = vld [vmem:[%s6321_s9 + $0x3c] sm:$0xc]  ;;  %v2743_v31 = vld [vmem:[%s6321_s9 + $0x50] sm:$0x3]  ;;  %v4626_v38 = vrot.slane %v2741_v25, 10 }
  0xcb   : > { %5170 = vmatpush3.bf16.msra.mxu1 %v5914_v23  ;;  %v2858_v23 = vrot.slane %v2728_v4, 6  ;;  %v4625_v28 = vrot.slane %v2738_v15, 10  ;;  %v2744_v49 = vld [vmem:[%s6321_s9 + $0x54] sm:$0xc]  ;;  %v2746_v50 = vld [vmem:[%s6321_s9 + $0x5c] sm:$0x3] }
  0xcc   : > { %5171 = vmatprep.subr.bf16.mxu1 %v5916_v40  ;;  %v6669_v15 = vld [vmem:[%s6321_s9 + $0xc0] sm:$0xff]  }
  0xcd   : > { %5140 = vmatmul.mubr.bf16.gmra.mrb[8].mxu1 %v6435_v56  ;;  %v2859_v47 = vsel %vm6586_vm5, %v2857_v27, %v2858_v23  ;;  %v2870_v23 = vsel %vm6586_vm5, %v4623_v54, %v2869_v44 }
  0xce   : > { %5348 = vmatmul.mubr.bf16.gmra.mrb[24].mxu0 %v6581_v43  ;;  %5143 = vmatprep.mubr.bf16.mxu1 %v6440_v58  ;;  %v4641_v4 = vcombine.low %v2856_v45, %v2859_v47  ;;  %v2893_v45 = vrot.slane %v2743_v31, 6  ;;  %v5925_v47 = vld [vmem:[#allocation6 + $0x158] sm:$0xff]  }
  0xcf   : > { %5351 = vmatprep.mubr.bf16.mxu0 %v4610_v48  ;;  %5172 = vmatpush3.bf16.msra.mxu1 %v5916_v40  ;;  %v2735_v40 = vld [vmem:[%s6321_s9 + $0x30] sm:$0xc]  ;;  %v2876_v48 = vrot.slane %v2736_v51, 6 }
  0xd0   : > { %5173 = vmatprep.subr.bf16.mxu1 %v5918_v59  ;;  %v4624_v63 = vrot.slane %v2735_v40, 10 }
  0xd1   : > { %v2878_v7 = vrot.slane %v2876_v48, 4 }
  0xd3   : > { %5174 = vmatpush3.bf16.msra.mxu1 %v5918_v59  ;;  %v2871_v59 = vrot.slane %v2869_v44, 4  ;;  %v2880_v27 = vsel %vm6586_vm5, %v2878_v7, %v2879_v13  ;;  %v2745_v44 = vld [vmem:[%s6321_s9 + $0x58] sm:$0xf]  ;;  %v2749_v7 = vld [vmem:[%s6321_s9 + $0x68] sm:$0x3] }
  0xd4   : > { %5175 = vmatprep.subr.bf16.mxu1 %v5920_v20  ;;  %v2897_v52 = vrot.slane %v2745_v44, 6  ;;  %v2907_v25 = vrot.slane %v2749_v7, 6  ;;  %v2757_v7 = vld [vmem:[%s6321_s9 + $0x88] sm:$0xf] }
  0xd5   : > { %5144 = vmatmul.mubr.bf16.gmra.mrb[12].mxu1 %v6447_v62 }
  0xd6   : > { %5352 = vmatmul.mubr.bf16.gmra.mrb[28].mxu0 %v4611_v24  ;;  %5147 = vmatprep.mubr.bf16.mxu1 %v6450_v1  ;;  %v2873_v24 = vsel %vm6586_vm5, %v2871_v59, %v2872_v5  ;;  %v2747_v5 = vld [vmem:[%s6321_s9 + $0x60] sm:$0xc] }
  0xd7   : > { %5371 = vmatprep.mubr.bf16.mxu0 %v4640_v26  ;;  %5176 = vmatpush3.bf16.msra.mxu1 %v5920_v20  ;;  %v2883_v20 = vrot.slane %v2739_v16, 6  ;;  %v2877_v26 = vsel %vm6586_vm5, %v4624_v63, %v2876_v48  ;;  %v6644_v51 = vcombine.low %v2870_v23, %v2873_v24  ;;  %v2748_v48 = vld [vmem:[%s6321_s9 + $0x64] sm:$0xf]  ;;  %v4628_v23 = vrot.slane %v2747_v5, 10 }
  0xd8   : > { %5177 = vmatprep.subr.bf16.mxu1 %v5924_v41  ;;  %v6646_v36 = vcombine.low %v2877_v26, %v2880_v27  ;;  %v2904_v63 = vrot.slane %v2748_v48, 6  ;;  %v2751_v26 = vld [vmem:[%s6321_s9 + $0x70] sm:$0xf]  ;;  %v5929_v27 = vld [vmem:[#allocation6 + $0x168] sm:$0xff]  }
  0xd9   : > { %v2885_v32 = vrot.slane %v2883_v20, 4  ;;  %v2884_v54 = vsel %vm6586_vm5, %v4625_v28, %v2883_v20  ;;  %v2899_v20 = vrot.slane %v2897_v52, 4  ;;  %v2754_v28 = vld [vmem:[%s6321_s9 + $0x7c] sm:$0xf]  ;;  %v6690_v48 = vld [vmem:[%s6321_s9 + $0xcc] sm:$0xff]  }
  0xda   : > { %v2906_v24 = vrot.slane %v2904_v63, 4 }
  0xdb   : > { %5178 = vmatpush3.bf16.msra.mxu1 %v5924_v41  ;;  %v2886_v41 = vrot.slane %v2740_v17, 6 }
  0xdc   : > { %5211 = vmatprep.subr.bf16.mxu1 %v6621_v53  ;;  %v2908_v44 = vsel %vm6586_vm5, %v2906_v24, %v2907_v25  ;;  %v2925_v25 = vrot.slane %v2757_v7, 6  ;;  %v5950_v7 = vld [vmem:[%s6321_s9 + $0x48] sm:$0xff]  }
  0xdd   : > { %5148 = vmatmul.mubr.bf16.gmra.mrb[16].mxu1 %v6460_v9  ;;  %v2887_v59 = vsel %vm6586_vm5, %v2885_v32, %v2886_v41  ;;  %v2911_v32 = vrot.slane %v2751_v26, 6  ;;  %v2905_v41 = vsel %vm6586_vm5, %v4628_v23, %v2904_v63 }
  0xde   : > { %5372 = vmatmul.mubr.bf16.vlgmr.msra.gmra.mrb[0].mxu0 %v4641_v4  ;;  %5151 = vmatprep.mubr.bf16.mxu1 %v6466_v12  ;;  %v5927_v4 = vld [vmem:[#allocation6 + $0x160] sm:$0xff]   ;;  %v6666_v13 = vcombine.low %v2884_v54, %v2887_v59  ;;  %v6696_v54 = vcombine.low %v2905_v41, %v2908_v44  ;;  %v2761_v44 = vld [vmem:[%s6321_s9 + $0x98] sm:$0x3] }
  0xdf   : > { %5404 = vmatpush3.bf16.msra.mxu0 %v6532_v35  ;;  %5375 = vmatprep.mubr.bf16.mxu0 %v6624_v2  ;;  %v2890_v35 = vrot.slane %v2742_v19, 6  ;;  %v4627_v19 = vrot.slane %v2744_v49, 10  ;;  %v2753_v49 = vld [vmem:[%s6321_s9 + $0x78] sm:$0xc]  ;;  %v2913_v5 = vrot.slane %v2911_v32, 4  ;;  %v6714_v41 = vld [vmem:[#allocation6 + $0x200] sm:$0xff]  }
  0xe0   : > { %5405 = vmatprep.subr.bf16.mxu0 %v5919_v0 }
  0xe1   : > { %v2892_v40 = vrot.slane %v2890_v35, 4 }
  0xe3   : > { %5406 = vmatpush3.bf16.msra.mxu0 %v5919_v0  ;;  %v2891_v0 = vsel %vm6586_vm5, %v4626_v38, %v2890_v35  ;;  %v2894_v16 = vsel %vm6586_vm5, %v2892_v40, %v2893_v45  ;;  %v2898_v35 = vsel %vm6586_vm5, %v4627_v19, %v2897_v52  ;;  %v2750_v38 = vld [vmem:[%s6321_s9 + $0x6c] sm:$0xc]  ;;  %v2752_v40 = vld [vmem:[%s6321_s9 + $0x74] sm:$0x3]  ;;  %v2918_v45 = vrot.slane %v2754_v28, 6 }
  0xe4   : > { %5407 = vmatprep.subr.bf16.mxu0 %v5921_v22  ;;  %v6671_v17 = vcombine.low %v2891_v0, %v2894_v16  ;;  %v4629_v59 = vrot.slane %v2750_v38, 10  ;;  %v2914_v63 = vrot.slane %v2752_v40, 6  ;;  %v5933_v19 = vld [vmem:[#allocation6 + $0x178] sm:$0xff]   ;;  %v2756_v28 = vld [vmem:[%s6321_s9 + $0x84] sm:$0xc] }
  0xe5   : > { %5152 = vmatmul.mubr.bf16.gmra.mrb[20].mxu1 %v6481_v29  ;;  %v2920_v0 = vrot.slane %v2918_v45, 4 }
  0xe6   : > { %5376 = vmatmul.mubr.bf16.gmra.mrb[4].mxu0 %v6644_v51  ;;  %5155 = vmatprep.mubr.bf16.mxu1 %v6486_v33  ;;  %v2912_v23 = vsel %vm6586_vm5, %v4629_v59, %v2911_v32  ;;  %v2915_v24 = vsel %vm6586_vm5, %v2913_v5, %v2914_v63  ;;  %v2759_v32 = vld [vmem:[%s6321_s9 + $0x90] sm:$0xc]  ;;  %v2935_v63 = vrot.slane %v2761_v44, 6 }
  0xe7   : > { %5379 = vmatprep.mubr.bf16.mxu0 %v6646_v36  ;;  %5408 = vmatpush3.bf16.msra.mxu0 %v5921_v22  ;;  %v2900_v22 = vrot.slane %v2746_v50, 6  ;;  %v2755_v50 = vld [vmem:[%s6321_s9 + $0x80] sm:$0x3]  ;;  %v6718_v38 = vcombine.low %v2912_v23, %v2915_v24  ;;  %v4632_v59 = vrot.slane %v2759_v32, 10  ;;  %v2767_v32 = vld [vmem:[%s6321_s9 + $0xb0] sm:$0x3] }
  0xe8   : > { %5409 = vmatprep.subr.bf16.mxu0 %v5925_v47  ;;  %v2921_v16 = vrot.slane %v2755_v50, 6  ;;  %v5928_v50 = vld [vmem:[#allocation6 + $0x48] sm:$0xff]  }
  0xe9   : > { %v2901_v31 = vsel %vm6586_vm5, %v2899_v20, %v2900_v22  ;;  %v2760_v20 = vld [vmem:[%s6321_s9 + $0x94] sm:$0xf] }
  0xea   : > { %v6694_v52 = vcombine.low %v2898_v35, %v2901_v31  ;;  %v5948_v22 = vld [vmem:[%s6321_s9 + $0x30] sm:$0xff]   ;;  %v2758_v35 = vld [vmem:[%s6321_s9 + $0x8c] sm:$0x3]  ;;  %v2932_v31 = vrot.slane %v2760_v20, 6 }
  0xeb   : > { %5410 = vmatpush3.bf16.msra.mxu0 %v5925_v47  ;;  %v5931_v47 = vld [vmem:[#allocation6 + $0x170] sm:$0xff]  }
  0xec   : > { %5411 = vmatprep.subr.bf16.mxu0 %v5927_v4  ;;  %v2934_v5 = vrot.slane %v2932_v31, 4  ;;  %v2933_v24 = vsel %vm6586_vm5, %v4632_v59, %v2932_v31  ;;  %v2949_v59 = vrot.slane %v2767_v32, 6  ;;  %v5938_v32 = vld [vmem:[#allocation6 + $0x70] sm:$0xff]  }
  0xed   : > { %5156 = vmatmul.mubr.bf16.gmra.mrb[24].mxu1 %v6509_v3 }
  0xee   : > { %5380 = vmatmul.mubr.bf16.gmra.mrb[8].mxu0 %v6666_v13  ;;  %5159 = vmatprep.mubr.bf16.mxu1 %v6669_v15 }
  0xef   : > { %5383 = vmatprep.mubr.bf16.mxu0 %v6671_v17  ;;  %5412 = vmatpush3.bf16.msra.mxu0 %v5927_v4  ;;  %v4630_v4 = vrot.slane %v2753_v49, 10  ;;  %v2928_v49 = vrot.slane %v2758_v35, 6  ;;  %v2765_v35 = vld [vmem:[%s6321_s9 + $0xa8] sm:$0xc] }
  0xf0   : > { %5413 = vmatprep.subr.bf16.mxu0 %v5929_v27 }
  0xf1   : > { %v2919_v26 = vsel %vm6586_vm5, %v4630_v4, %v2918_v45  ;;  %v4631_v45 = vrot.slane %v2756_v28, 10  ;;  %v2763_v4 = vld [vmem:[%s6321_s9 + $0xa0] sm:$0xf] }
  0xf2   : > { %v2939_v23 = vrot.slane %v2763_v4, 6  ;;  %v4634_v4 = vrot.slane %v2765_v35, 10 }
  0xf3   : > { %5414 = vmatpush3.bf16.msra.mxu0 %v5929_v27  ;;  %v2922_v27 = vsel %vm6586_vm5, %v2920_v0, %v2921_v16  ;;  %v5949_v0 = vld [vmem:[%s6321_s9 + $0x3c] sm:$0xff]   ;;  %v2766_v16 = vld [vmem:[%s6321_s9 + $0xac] sm:$0xf] }
  0xf4   : > { %5415 = vmatprep.subr.bf16.mxu0 %v5931_v47  ;;  %v6720_v40 = vcombine.low %v2919_v26, %v2922_v27  ;;  %v2936_v26 = vsel %vm6586_vm5, %v2934_v5, %v2935_v63  ;;  %v2764_v27 = vld [vmem:[%s6321_s9 + $0xa4] sm:$0x3]  ;;  %v2946_v28 = vrot.slane %v2766_v16, 6  ;;  %v5932_v5 = vld [vmem:[#allocation6 + $0x58] sm:$0xff]  }
  0xf5   : > { %5160 = vmatmul.mubr.bf16.gmra.mrb[28].mxu1 %v6690_v48  ;;  %v2769_v63 = vld [vmem:[%s6321_s9 + $0xb8] sm:$0xf] }
  0xf6   : > { %5384 = vmatmul.mubr.bf16.gmra.mrb[12].mxu0 %v6694_v52  ;;  %5179 = vmatprep.mubr.bf16.mxu1 %v5948_v22  ;;  %v5930_v22 = vld [vmem:[#allocation6 + $0x50] sm:$0xff]   ;;  %v2948_v31 = vrot.slane %v2946_v28, 4  ;;  %v2953_v16 = vrot.slane %v2769_v63, 6 }
  0xf7   : > { %5387 = vmatprep.mubr.bf16.mxu0 %v6696_v54  ;;  %5416 = vmatpush3.bf16.msra.mxu0 %v5931_v47  ;;  %v2927_v47 = vrot.slane %v2925_v25, 4 }
  0xf8   : > { %5417 = vmatprep.subr.bf16.mxu0 %v5933_v19 }
  0xf9   : > { %v2929_v20 = vsel %vm6586_vm5, %v2927_v47, %v2928_v49  ;;  %v2941_v47 = vrot.slane %v2939_v23, 4  ;;  %v2942_v49 = vrot.slane %v2764_v27, 6 }
  0xfb   : > { %5418 = vmatpush3.bf16.msra.mxu0 %v5933_v19  ;;  %v2926_v19 = vsel %vm6586_vm5, %v4631_v45, %v2925_v25  ;;  %v6744_v25 = vcombine.low %v2933_v24, %v2936_v26 }
  0xfc   : > { %5451 = vmatprep.subr.bf16.mxu0 %v6714_v41  ;;  %v6742_v44 = vcombine.low %v2926_v19, %v2929_v20  ;;  %v2768_v19 = vld [vmem:[%s6321_s9 + $0xb4] sm:$0xc]  ;;  %v2770_v20 = vld [vmem:[%s6321_s9 + $0xbc] sm:$0x3] }
  0xfd   : > { %5180 = vmatmul.mubr.bf16.vlgmr.msra.gmra.mrb[0].mxu1 %v5949_v0  ;;  %v2943_v0 = vsel %vm6586_vm5, %v2941_v47, %v2942_v49  ;;  %v2956_v27 = vrot.slane %v2770_v20, 6  ;;  %v6779_v47 = vld [vmem:[#allocation6 + $0x100] sm:$0xff]   ;;  %v5940_v49 = vld [vmem:[%s6321_s9 + $0xd8] sm:$0xff]  }
  0xfe   : > { %5388 = vmatmul.mubr.bf16.gmra.mrb[16].mxu0 %v6718_v38  ;;  %5212 = vmatpush3.bf16.msra.mxu1 %v6621_v53  ;;  %v2762_v53 = vld [vmem:[%s6321_s9 + $0x9c] sm:$0xc] }
  0xff   : > { %5183 = vmatprep.mubr.bf16.mxu1 %v5950_v7  ;;  %5391 = vmatprep.mubr.bf16.mxu0 %v6720_v40  ;;  %v4633_v45 = vrot.slane %v2762_v53, 10  ;;  %v2947_v7 = vsel %vm6586_vm5, %v4634_v4, %v2946_v28  ;;  %v2955_v53 = vrot.slane %v2953_v16, 4 }
 0x100   : > { %5213 = vmatprep.subr.bf16.mxu1 %v5928_v50 }
 0x101   : > { %v2957_v35 = vsel %vm6586_vm5, %v2955_v53, %v2956_v27 }
 0x102   : > { %5214 = vmatpush3.bf16.msra.mxu1 %v5928_v50  ;;  %v2940_v50 = vsel %vm6586_vm5, %v4633_v45, %v2939_v23  ;;  %v4635_v23 = vrot.slane %v2768_v19, 10 }
 0x103   : > { %5215 = vmatprep.subr.bf16.mxu1 %v5930_v22  ;;  %v6761_v24 = vcombine.low %v2940_v50, %v2943_v0  ;;  %v1420_v0 = vld [vmem:[%s6321_s9 + $0xc] sm:$0xe] }
 0x104   : > { %v2954_v28 = vsel %vm6586_vm5, %v4635_v23, %v2953_v16  ;;  %v1422_v16 = vld [vmem:[%s6321_s9 + $0x14] sm:$0x1]  ;;  %v5947_v23 = vld [vmem:[#allocation6 + $0x238] sm:$0xff]  }
 0x105   : > { %5184 = vmatmul.mubr.bf16.gmra.mrb[4].mxu1 %v6435_v56  ;;  %v2950_v56 = vsel %vm6586_vm5, %v2948_v31, %v2949_v59  ;;  %v6773_v45 = vcombine.low %v2954_v28, %v2957_v35  ;;  %v2772_v28 = vld [vmem:[%s6321_s9 + $0xc4] sm:$0xf] }
 0x106   : > { %5392 = vmatmul.mubr.bf16.gmra.mrb[20].mxu0 %v6742_v44  ;;  %5187 = vmatprep.mubr.bf16.mxu1 %v6440_v58  ;;  %v5934_v58 = vld [vmem:[#allocation6 + $0x60] sm:$0xff]   ;;  %v6763_v26 = vcombine.low %v2947_v7, %v2950_v56  ;;  %v5946_v7 = vld [vmem:[#allocation6 + $0x230] sm:$0xff]   ;;  %v2960_v35 = vrot.slane %v2772_v28, 6 }
 0x107   : > { %5395 = vmatprep.mubr.bf16.mxu0 %v6744_v25  ;;  %5216 = vmatpush3.bf16.msra.mxu1 %v5930_v22  ;;  %v5936_v22 = vld [vmem:[#allocation6 + $0x68] sm:$0xff]  }
 0x108   : > { %5217 = vmatprep.subr.bf16.mxu1 %v5932_v5  ;;  %v5941_v56 = vld [vmem:[%s6321_s9 + $0xe4] sm:$0xff]  }
 0x10b   : > { %5218 = vmatpush3.bf16.msra.mxu1 %v5932_v5  ;;  %v5945_v5 = vld [vmem:[#allocation6 + $0x228] sm:$0xff]  }
 0x10c   : > { %5219 = vmatprep.subr.bf16.mxu1 %v5934_v58 }
 0x10d   : > { %5188 = vmatmul.mubr.bf16.gmra.mrb[8].mxu1 %v6447_v62  ;;  %v5942_v62 = vld [vmem:[#allocation6 + $0x78] sm:$0xff]  }
 0x10e   : > { %5396 = vmatmul.mubr.bf16.gmra.mrb[24].mxu0 %v6761_v24  ;;  %5191 = vmatprep.mubr.bf16.mxu1 %v6450_v1  ;;  %v5937_v1 = vld [vmem:[#allocation6 + $0x208] sm:$0xff]  }
 0x10f   : > { %5399 = vmatprep.mubr.bf16.mxu0 %v6763_v26  ;;  %5220 = vmatpush3.bf16.msra.mxu1 %v5934_v58  ;;  %v1552_v58 = vrot.slane %v1422_v16, 5 }
 0x110   : > { %5221 = vmatprep.subr.bf16.mxu1 %v5936_v22 }
 0x113   : > { %5222 = vmatpush3.bf16.msra.mxu1 %v5936_v22 }
 0x114   : > { %5223 = vmatprep.subr.bf16.mxu1 %v5938_v32 }
 0x115   : > { %5192 = vmatmul.mubr.bf16.gmra.mrb[12].mxu1 %v6460_v9  ;;  %v5939_v9 = vld [vmem:[#allocation6 + $0x210] sm:$0xff]  }
 0x116   : > { %5400 = vmatmul.mubr.bf16.gmra.mrb[28].mxu0 %v6773_v45  ;;  %5195 = vmatprep.mubr.bf16.mxu1 %v6466_v12  ;;  %v5943_v12 = vld [vmem:[#allocation6 + $0x218] sm:$0xff]  }
 0x117   : > { %5419 = vmatprep.mubr.bf16.mxu0 %v6624_v2  ;;  %5224 = vmatpush3.bf16.msra.mxu1 %v5938_v32  ;;  %v1418_v2 = vld [vmem:[%s6321_s9 + $0x4] sm:$0xf]  ;;  %v2771_v32 = vld [vmem:[%s6321_s9 + $0xc0] sm:$0xc] }
 0x118   : > { %5225 = vmatprep.subr.bf16.mxu1 %v5942_v62 }
 0x11b   : > { %5226 = vmatpush3.bf16.msra.mxu1 %v5942_v62  ;;  %v2773_v62 = vld [vmem:[%s6321_s9 + $0xc8] sm:$0x3] }
 0x11c   : > { %5499 = vmatprep.subr.bf16.mxu1 %v6779_v47 }
 0x11d   : > { %5196 = vmatmul.mubr.bf16.gmra.mrb[16].mxu1 %v6481_v29  ;;  %v1542_v29 = vrot.slane %v1418_v2, 5  ;;  %v2963_v2 = vrot.slane %v2773_v62, 6 }
 0x11e   : > { %5420 = vmatmul.mubr.bf16.vlgmr.msra.gmra.mrb[0].mxu0 %v6644_v51  ;;  %5199 = vmatprep.mubr.bf16.mxu1 %v6486_v33  ;;  %v1417_v33 = vld [vmem:[%s6321_s9] sm:$0xe]  ;;  %v1419_v51 = vld [vmem:[%s6321_s9 + $0x8] sm:$0x1] }
 0x11f   : > { %5452 = vmatpush3.bf16.msra.mxu0 %v6714_v41  ;;  %5423 = vmatprep.mubr.bf16.mxu0 %v6646_v36  ;;  %v5944_v41 = vld [vmem:[#allocation6 + $0x220] sm:$0xff]   ;;  %v4556_v4 = vrot.slane %v1417_v33, 9  ;;  %v1544_v31 = vrot.slane %v1542_v29, 4  ;;  %v1545_v59 = vrot.slane %v1419_v51, 5  ;;  %v5954_v51 = vld [vmem:[#allocation6 + $0x118] sm:$0xff]  }
 0x120   : > { %5453 = vmatprep.subr.bf16.mxu0 %v5937_v1 }
 0x121   : > { %v1543_v63 = vsel %vm6331_vm2, %v4556_v4, %v1542_v29  ;;  %v1546_v50 = vsel %vm6331_vm2, %v1544_v31, %v1545_v59  ;;  %v2775_v29 = vld [vmem:[%s6321_s9 + $0xd0] sm:$0xf] }
 0x122   : > { %v4576_v19 = vcombine.low %v1543_v63, %v1546_v50  ;;  %v5957_v50 = vld [vmem:[#allocation6 + $0x130] sm:$0xff]  }
 0x123   : > { %5454 = vmatpush3.bf16.msra.mxu0 %v5937_v1  ;;  %v5953_v1 = vld [vmem:[#allocation6 + $0x110] sm:$0xff]  }
 0x124   : > { %5455 = vmatprep.subr.bf16.mxu0 %v5939_v9 }
 0x125   : > { %5200 = vmatmul.mubr.bf16.gmra.mrb[20].mxu1 %v6509_v3  ;;  %v1421_v3 = vld [vmem:[%s6321_s9 + $0x10] sm:$0xf] }
 0x126   : > { %5424 = vmatmul.mubr.bf16.gmra.mrb[4].mxu0 %v6666_v13  ;;  %5203 = vmatprep.mubr.bf16.mxu1 %v6669_v15  ;;  %v1549_v15 = vrot.slane %v1421_v3, 5 }
 0x127   : > { %5427 = vmatprep.mubr.bf16.mxu0 %v6671_v17  ;;  %5456 = vmatpush3.bf16.msra.mxu0 %v5939_v9  ;;  %v4636_v9 = vrot.slane %v2771_v32, 10 }
 0x128   : > { %5457 = vmatprep.subr.bf16.mxu0 %v5943_v12  ;;  %v1551_v20 = vrot.slane %v1549_v15, 4 }
 0x12a   : > { %v1553_v27 = vsel %vm6331_vm2, %v1551_v20, %v1552_v58 }
 0x12b   : > { %5458 = vmatpush3.bf16.msra.mxu0 %v5943_v12  ;;  %v2962_v12 = vrot.slane %v2960_v35, 4 }
 0x12c   : > { %5459 = vmatprep.subr.bf16.mxu0 %v5944_v41 }
 0x12d   : > { %5204 = vmatmul.mubr.bf16.gmra.mrb[24].mxu1 %v6690_v48  ;;  %v4557_v48 = vrot.slane %v1420_v0, 9  ;;  %v2964_v33 = vsel %vm6586_vm5, %v2962_v12, %v2963_v2 }
 0x12e   : > { %5428 = vmatmul.mubr.bf16.gmra.mrb[8].mxu0 %v6694_v52  ;;  %5207 = vmatprep.mubr.bf16.mxu1 %v5940_v49  ;;  %v2776_v49 = vld [vmem:[%s6321_s9 + $0xd4] sm:$0x3] }
 0x12f   : > { %5431 = vmatprep.mubr.bf16.mxu0 %v6696_v54  ;;  %5460 = vmatpush3.bf16.msra.mxu0 %v5944_v41  ;;  %v1550_v53 = vsel %vm6331_vm2, %v4557_v48, %v1549_v15  ;;  %v2774_v41 = vld [vmem:[%s6321_s9 + $0xcc] sm:$0xc]  ;;  %v2970_v59 = vrot.slane %v2776_v49, 6 }
 0x130   : > { %5461 = vmatprep.subr.bf16.mxu0 %v5945_v5  ;;  %v4577_v22 = vcombine.low %v1550_v53, %v1553_v27  ;;  %v5956_v15 = vld [vmem:[#allocation6 + $0x128] sm:$0xff]  }
 0x133   : > { %5462 = vmatpush3.bf16.msra.mxu0 %v5945_v5 }
 0x134   : > { %5463 = vmatprep.subr.bf16.mxu0 %v5946_v7 }
 0x135   : > { %5208 = vmatmul.mubr.bf16.gmra.mrb[28].mxu1 %v5941_v56 }
 0x136   : > { %5432 = vmatmul.mubr.bf16.gmra.mrb[12].mxu0 %v6718_v38  ;;  %5227 = vmatprep.mubr.bf16.mxu1 %v4576_v19 }
 0x137   : > { %5435 = vmatprep.mubr.bf16.mxu0 %v6720_v40  ;;  %5464 = vmatpush3.bf16.msra.mxu0 %v5946_v7 }
 0x138   : > { %5465 = vmatprep.subr.bf16.mxu0 %v5947_v23 }
 0x13b   : > { %5466 = vmatpush3.bf16.msra.mxu0 %v5947_v23 }
 0x13d   : > { %5228 = vmatmul.mubr.bf16.vlgmr.msra.gmra.mrb[0].mxu1 %v4577_v22 }
 0x13e   : > { %5436 = vmatmul.mubr.bf16.gmra.mrb[16].mxu0 %v6742_v44  ;;  %5507 = vmatpush3.bf16.msra.mxu1 %v6779_v47  ;;  %v2961_v47 = vsel %vm6586_vm5, %v4636_v9, %v2960_v35 }
 0x13f   : > { %5231 = vmatprep.mubr.bf16.mxu1 %v6346_v30  ;;  %5439 = vmatprep.mubr.bf16.mxu0 %v6744_v25  ;;  %v2967_v30 = vrot.slane %v2775_v29, 6  ;;  %v4664_v4 = vcombine.low %v2961_v47, %v2964_v33 }
 0x140   : > { %5500 = vmatprep.subr.bf16.mxu1 %v5952_v8 }
 0x141   : > { %v2969_v31 = vrot.slane %v2967_v30, 4 }
 0x142   : > { %5508 = vmatpush3.bf16.msra.mxu1 %v5952_v8 }
 0x143   : > { %5501 = vmatprep.subr.bf16.mxu1 %v5953_v1  ;;  %v2971_v5 = vsel %vm6586_vm5, %v2969_v31, %v2970_v59 }
 0x145   : > { %5232 = vmatmul.mubr.bf16.gmra.mrb[4].mxu1 %v6367_v55  ;;  %v4637_v55 = vrot.slane %v2774_v41, 10 }
 0x146   : > { %5440 = vmatmul.mubr.bf16.gmra.mrb[20].mxu0 %v6761_v24  ;;  %5235 = vmatprep.mubr.bf16.mxu1 %v6371_v61  ;;  %v5955_v61 = vld [vmem:[#allocation6 + $0x120] sm:$0xff]  }
 0x147   : > { %5443 = vmatprep.mubr.bf16.mxu0 %v6763_v26  ;;  %5509 = vmatpush3.bf16.msra.mxu1 %v5953_v1  ;;  %v2968_v3 = vsel %vm6586_vm5, %v4637_v55, %v2967_v30 }
 0x148   : > { %5502 = vmatprep.subr.bf16.mxu1 %v5954_v51  ;;  %v4665_v63 = vcombine.low %v2968_v3, %v2971_v5 }
 0x14b   : > { %5510 = vmatpush3.bf16.msra.mxu1 %v5954_v51 }
 0x14c   : > { %5503 = vmatprep.subr.bf16.mxu1 %v5955_v61 }
 0x14d   : > { %5236 = vmatmul.mubr.bf16.gmra.mrb[8].mxu1 %v6394_v18  ;;  %v5958_v18 = vld [vmem:[#allocation6 + $0x138] sm:$0xff]  }
 0x14e   : > { %5444 = vmatmul.mubr.bf16.gmra.mrb[24].mxu0 %v6773_v45  ;;  %5239 = vmatprep.mubr.bf16.mxu1 %v6396_v21  ;;  %v2778_v21 = vld [vmem:[%s6321_s9 + $0xdc] sm:$0xf] }
 0x14f   : > { %5447 = vmatprep.mubr.bf16.mxu0 %v4664_v4  ;;  %5511 = vmatpush3.bf16.msra.mxu1 %v5955_v61 }
 0x150   : > { %5504 = vmatprep.subr.bf16.mxu1 %v5956_v15 }
 0x153   : > { %5512 = vmatpush3.bf16.msra.mxu1 %v5956_v15 }
 0x154   : > { %5505 = vmatprep.subr.bf16.mxu1 %v5957_v50 }
 0x155   : > { %5240 = vmatmul.mubr.bf16.gmra.mrb[12].mxu1 %v6419_v42  ;;  %v2974_v42 = vrot.slane %v2778_v21, 6 }
 0x156   : > { %5448 = vmatmul.mubr.bf16.gmra.mrb[28].mxu0 %v4665_v63  ;;  %5243 = vmatprep.mubr.bf16.mxu1 %v6424_v46  ;;  %v2777_v46 = vld [vmem:[%s6321_s9 + $0xd8] sm:$0xc] }
 0x157   : > { %5467 = vmatprep.mubr.bf16.mxu0 %v6646_v36  ;;  %5513 = vmatpush3.bf16.msra.mxu1 %v5957_v50  ;;  %v4638_v36 = vrot.slane %v2777_v46, 10 }
 0x158   : > { %5506 = vmatprep.subr.bf16.mxu1 %v5958_v18 }
 0x15b   : > { %5514 = vmatpush3.bf16.msra.mxu1 %v5958_v18 }
 0x15d   : > { %5244 = vmatmul.mubr.bf16.gmra.mrb[16].mxu1 %v6437_v57  ;;  %v2779_v57 = vld [vmem:[%s6321_s9 + $0xe0] sm:$0x3] }
 0x15e   : > { %5468 = vmatmul.mubr.bf16.vlgmr.msra.gmra.mrb[0].mxu0 %v6666_v13  ;;  %5247 = vmatprep.mubr.bf16.mxu1 %v6488_v34  ;;  %v2976_v13 = vrot.slane %v2974_v42, 4 }
 0x15f   : > { %5471 = vmatprep.mubr.bf16.mxu0 %v6671_v17  ;;  %v2977_v17 = vrot.slane %v2779_v57, 6 }
 0x165   : > { %5248 = vmatmul.mubr.bf16.gmra.mrb[20].mxu1 %v6511_v6 }
 0x166   : > { %5472 = vmatmul.mubr.bf16.gmra.mrb[4].mxu0 %v6694_v52  ;;  %5251 = vmatprep.mubr.bf16.mxu1 %v6513_v11  ;;  %v2978_v52 = vsel %vm6586_vm5, %v2976_v13, %v2977_v17 }
 0x167   : > { %5475 = vmatprep.mubr.bf16.mxu0 %v6696_v54  ;;  %v2780_v54 = vld [vmem:[%s6321_s9 + $0xe4] sm:$0xc] }
 0x16d   : > { %5252 = vmatmul.mubr.bf16.gmra.mrb[24].mxu1 %v6535_v37 }
 0x16e   : > { %5476 = vmatmul.mubr.bf16.gmra.mrb[8].mxu0 %v6718_v38  ;;  %5255 = vmatprep.mubr.bf16.mxu1 %v6537_v39  ;;  %v2782_v38 = vld [vmem:[%s6321_s9 + $0xec] sm:$0x3] }
 0x16f   : > { %5479 = vmatprep.mubr.bf16.mxu0 %v6720_v40 }
 0x175   : > { %5256 = vmatmul.mubr.bf16.gmra.mrb[28].mxu1 %v6559_v10 }
 0x176   : > { %5480 = vmatmul.mubr.bf16.gmra.mrb[12].mxu0 %v6742_v44  ;;  %5291 = vmatprep.mubr.bf16.mxu1 %v6488_v34  ;;  %v2781_v34 = vld [vmem:[%s6321_s9 + $0xe8] sm:$0xf]  ;;  %v4639_v44 = vrot.slane %v2780_v54, 10 }
 0x177   : > { %5483 = vmatprep.mubr.bf16.mxu0 %v6744_v25 }
 0x17d   : > { %5292 = vmatmul.mubr.bf16.vlgmr.msra.gmra.mrb[16].mxu1 %v6511_v6  ;;  %v2981_v6 = vrot.slane %v2781_v34, 6 }
 0x17e   : > { %5484 = vmatmul.mubr.bf16.gmra.mrb[16].mxu0 %v6761_v24  ;;  %5295 = vmatprep.mubr.bf16.mxu1 %v6513_v11  ;;  %v2975_v11 = vsel %vm6586_vm5, %v4638_v36, %v2974_v42  ;;  %v2984_v24 = vrot.slane %v2782_v38, 6 }
 0x17f   : > { %5487 = vmatprep.mubr.bf16.mxu0 %v6763_v26  ;;  %v4674_v40 = vcombine.low %v2975_v11, %v2978_v52  ;;  %v2983_v25 = vrot.slane %v2981_v6, 4 }
 0x185   : > { %5296 = vmatmul.mubr.bf16.gmra.mrb[20].mxu1 %v6535_v37  ;;  %v2982_v37 = vsel %vm6586_vm5, %v4639_v44, %v2981_v6 }
 0x186   : > { %5488 = vmatmul.mubr.bf16.gmra.mrb[20].mxu0 %v6773_v45  ;;  %5299 = vmatprep.mubr.bf16.mxu1 %v6537_v39  ;;  %v2985_v39 = vsel %vm6586_vm5, %v2983_v25, %v2984_v24 }
 0x187   : > { %5491 = vmatprep.mubr.bf16.mxu0 %v4664_v4  ;;  %v4675_v26 = vcombine.low %v2982_v37, %v2985_v39 }
 0x18d   : > { %5300 = vmatmul.mubr.bf16.gmra.mrb[24].mxu1 %v6559_v10 }
 0x18e   : > { %5492 = vmatmul.mubr.bf16.gmra.mrb[24].mxu0 %v4665_v63  ;;  %5303 = vmatprep.mubr.bf16.mxu1 %v6561_v14 }
 0x18f   : > { %5495 = vmatprep.mubr.bf16.mxu0 %v4674_v40 }
 0x195   : > { %5304 = vmatmul.mubr.bf16.gmra.mrb[28].mxu1 %v6581_v43 }
 0x196   : > { %5496 = vmatmul.mubr.bf16.gmra.mrb[28].mxu0 %v4675_v26 }
 0x210   : > { %v5229_v45 = vpop.f32.mrb[0].mxu1 }
 0x211   : > { %v1842_v0 = vpop.f32.mrb[1].mxu1 }
 0x212   : > { %v5230_v16 = vpop.f32.mrb[2].mxu1 }
 0x213   : > { %v1845_v7 = vpop.f32.mrb[3].mxu1 }
 0x218   : > { %v5233_v10 = vpop.f32.mrb[4].mxu1 }
 0x219   : > { %v1858_v56 = vpop.f32.mrb[5].mxu1 }
 0x21a   : > { %v5234_v19 = vpop.f32.mrb[6].mxu1 }
 0x21b   : > { %v1861_v14 = vpop.f32.mrb[7].mxu1 }
 0x220   : > { %v5237_v48 = vpop.f32.mrb[8].mxu1 }
 0x221   : > { %v1874_v20 = vpop.f32.mrb[9].mxu1 }
 0x222   : > { %v5238_v58 = vpop.f32.mrb[10].mxu1 }
 0x223   : > { %v1877_v23 = vpop.f32.mrb[11].mxu1 }
 0x228   : > { %v6880_v53 = vpop.f32.mrb[12].mxu1 }
 0x229   : > { %v6882_v60 = vpop.f32.mrb[13].mxu1 }
 0x22a   : > { %v6884_v27 = vpop.f32.mrb[14].mxu1 }
 0x22b   : > { %v6886_v43 = vpop.f32.mrb[15].mxu1 }
 0x231   : > { %v5469_v22 = vpop.f32.mrb[0].mxu0 }
 0x232   : > { %v5515_v28 = vadd.f32 %v5469_v22, %v5229_v45  ;;  %v3806_v8 = vpop.f32.mrb[1].mxu0 }
 0x233   : > { %v5516_v35 = vadd.f32 %v3806_v8, %v1842_v0  ;;  %v5470_v32 = vpop.f32.mrb[2].mxu0 }
 0x234   : > { %v5517_v62 = vadd.f32 %v5470_v32, %v5230_v16  ;;  %v3809_v1 = vpop.f32.mrb[3].mxu0  ;;  %v4263_v33 = vmul.f32 %v5515_v28, %v5515_v28 }
 0x235   : > { %v5518_v9 = vadd.f32 %v3809_v1, %v1845_v7  ;;  %v4261_v2 = vmul.f32 %v5516_v35, %v5516_v35 }
 0x236   : > { %v4764_v12 = vpack.c.bf16 %v5517_v62, %v5515_v28  ;;  %v4264_v31 = vmul.f32 %v5517_v62, %v5517_v62 }
 0x237   : > { %v4759_v29 = vpack.c.bf16 %v5518_v9, %v5516_v35  ;;  %v4224_v30 = vadd.f32 %v5518_v9, %v5516_v35  ;;  %v4262_v47 = vmul.f32 %v5518_v9, %v5518_v9 }
 0x238   : > { %4836 = vst [vmem:[%s6889_s22 + $0x8] sm:$0xff] %v4764_v12  }
 0x239   : > { %4760 = vst [vmem:[%s6889_s22] sm:$0xff] %v4759_v29   ;;  %v4225_v51 = vadd.f32 %v5515_v28, %v4224_v30  ;;  %v4293_v41 = vadd.f32 %v4262_v47, %v4261_v2  ;;  %v5473_v49 = vpop.f32.mrb[4].mxu0 }
 0x23a   : > { %v5519_v4 = vadd.f32 %v5473_v49, %v5233_v10  ;;  %v3822_v55 = vpop.f32.mrb[5].mxu0 }
 0x23b   : > { %v4294_v59 = vadd.f32 %v4293_v41, %v4263_v33  ;;  %v5520_v61 = vadd.f32 %v3822_v55, %v1858_v56  ;;  %v4226_v3 = vadd.f32 %v5517_v62, %v4225_v51  ;;  %v5474_v5 = vpop.f32.mrb[6].mxu0 }
 0x23c   : > { %v5521_v15 = vadd.f32 %v5474_v5, %v5234_v19  ;;  %v3825_v63 = vpop.f32.mrb[7].mxu0  ;;  %v4267_v34 = vmul.f32 %v5519_v4, %v5519_v4 }
 0x23d   : > { %v4227_v50 = vadd.f32 %v5520_v61, %v4226_v3  ;;  %v4265_v18 = vmul.f32 %v5520_v61, %v5520_v61  ;;  %v4295_v21 = vadd.f32 %v4294_v59, %v4264_v31  ;;  %v5522_v42 = vadd.f32 %v3825_v63, %v1861_v14 }
 0x23e   : > { %v4774_v46 = vpack.c.bf16 %v5521_v15, %v5519_v4  ;;  %v4268_v40 = vmul.f32 %v5521_v15, %v5521_v15 }
 0x23f   : > { %v4296_v57 = vadd.f32 %v4295_v21, %v4265_v18  ;;  %v4769_v36 = vpack.c.bf16 %v5522_v42, %v5520_v61  ;;  %v4228_v13 = vadd.f32 %v5522_v42, %v4227_v50  ;;  %v4266_v17 = vmul.f32 %v5522_v42, %v5522_v42 }
 0x240   : > { %4838 = vst [vmem:[%s6889_s22 + $0x18] sm:$0xff] %v4774_v46  }
 0x241   : > { %4837 = vst [vmem:[%s6889_s22 + $0x10] sm:$0xff] %v4769_v36   ;;  %v4229_v6 = vadd.f32 %v5519_v4, %v4228_v13  ;;  %v4297_v11 = vadd.f32 %v4296_v57, %v4266_v17  ;;  %v5477_v52 = vpop.f32.mrb[8].mxu0 }
 0x242   : > { %v5523_v54 = vadd.f32 %v5477_v52, %v5237_v48  ;;  %v3838_v38 = vpop.f32.mrb[9].mxu0 }
 0x243   : > { %v4298_v44 = vadd.f32 %v4297_v11, %v4267_v34  ;;  %v5524_v25 = vadd.f32 %v3838_v38, %v1874_v20  ;;  %v4230_v24 = vadd.f32 %v5521_v15, %v4229_v6  ;;  %v5478_v37 = vpop.f32.mrb[10].mxu0 }
 0x244   : > { %v5525_v39 = vadd.f32 %v5478_v37, %v5238_v58  ;;  %v3841_v26 = vpop.f32.mrb[11].mxu0  ;;  %v4271_v48 = vmul.f32 %v5523_v54, %v5523_v54 }
 0x245   : > { %v4231_v45 = vadd.f32 %v5524_v25, %v4230_v24  ;;  %v4269_v0 = vmul.f32 %v5524_v25, %v5524_v25  ;;  %v4299_v16 = vadd.f32 %v4298_v44, %v4268_v40  ;;  %v5526_v7 = vadd.f32 %v3841_v26, %v1877_v23 }
 0x246   : > { %v4784_v10 = vpack.c.bf16 %v5525_v39, %v5523_v54  ;;  %v4272_v58 = vmul.f32 %v5525_v39, %v5525_v39 }
 0x247   : > { %v4300_v56 = vadd.f32 %v4299_v16, %v4269_v0  ;;  %v4779_v19 = vpack.c.bf16 %v5526_v7, %v5524_v25  ;;  %v4232_v14 = vadd.f32 %v5526_v7, %v4231_v45  ;;  %v4270_v22 = vmul.f32 %v5526_v7, %v5526_v7 }
 0x248   : > { %4840 = vst [vmem:[%s6889_s22 + $0x28] sm:$0xff] %v4784_v10  }
 0x249   : > { %4839 = vst [vmem:[%s6889_s22 + $0x20] sm:$0xff] %v4779_v19   ;;  %v4233_v28 = vadd.f32 %v5523_v54, %v4232_v14  ;;  %v4301_v8 = vadd.f32 %v4300_v56, %v4270_v22  ;;  %v5481_v20 = vpop.f32.mrb[12].mxu0 }
 0x24a   : > { %v5527_v35 = vadd.f32 %v5481_v20, %v6880_v53  ;;  %v3854_v32 = vpop.f32.mrb[13].mxu0 }
 0x24b   : > { %v4302_v62 = vadd.f32 %v4301_v8, %v4271_v48  ;;  %v5528_v1 = vadd.f32 %v3854_v32, %v6882_v60  ;;  %v4234_v23 = vadd.f32 %v5525_v39, %v4233_v28  ;;  %v5482_v9 = vpop.f32.mrb[14].mxu0 }
 0x24c   : > { %v5529_v12 = vadd.f32 %v5482_v9, %v6884_v27  ;;  %v3857_v2 = vpop.f32.mrb[15].mxu0  ;;  %v4275_v31 = vmul.f32 %v5527_v35, %v5527_v35 }
 0x24d   : > { %v4235_v29 = vadd.f32 %v5528_v1, %v4234_v23  ;;  %v4273_v30 = vmul.f32 %v5528_v1, %v5528_v1  ;;  %v4303_v47 = vadd.f32 %v4302_v62, %v4272_v58  ;;  %v5530_v33 = vadd.f32 %v3857_v2, %v6886_v43 }
 0x24e   : > { %v4794_v51 = vpack.c.bf16 %v5529_v12, %v5527_v35  ;;  %v4276_v63 = vmul.f32 %v5529_v12, %v5529_v12 }
 0x24f   : > { %v4304_v41 = vadd.f32 %v4303_v47, %v4273_v30  ;;  %v4789_v53 = vpack.c.bf16 %v5530_v33, %v5528_v1  ;;  %v4236_v49 = vadd.f32 %v5530_v33, %v4235_v29  ;;  %v4274_v4 = vmul.f32 %v5530_v33, %v5530_v33 }
 0x250   : > { %4842 = vst [vmem:[%s6889_s22 + $0x38] sm:$0xff] %v4794_v51   ;;  %v5293_v55 = vpop.f32.mrb[16].mxu1 }
 0x251   : > { %4841 = vst [vmem:[%s6889_s22 + $0x30] sm:$0xff] %v4789_v53   ;;  %v4237_v60 = vadd.f32 %v5527_v35, %v4236_v49  ;;  %v4305_v59 = vadd.f32 %v4304_v41, %v4274_v4  ;;  %v5485_v61 = vpop.f32.mrb[16].mxu0  ;;  %v2235_v3 = vpop.f32.mrb[17].mxu1 }
 0x252   : > { %v5531_v27 = vadd.f32 %v5485_v61, %v5293_v55  ;;  %v3870_v5 = vpop.f32.mrb[17].mxu0  ;;  %v5294_v15 = vpop.f32.mrb[18].mxu1 }
 0x253   : > { %v4306_v50 = vadd.f32 %v4305_v59, %v4275_v31  ;;  %v5532_v43 = vadd.f32 %v3870_v5, %v2235_v3  ;;  %v4238_v18 = vadd.f32 %v5529_v12, %v4237_v60  ;;  %v5486_v21 = vpop.f32.mrb[18].mxu0  ;;  %v2238_v42 = vpop.f32.mrb[19].mxu1 }
 0x254   : > { %v5533_v46 = vadd.f32 %v5486_v21, %v5294_v15  ;;  %v3873_v57 = vpop.f32.mrb[19].mxu0  ;;  %v4279_v44 = vmul.f32 %v5531_v27, %v5531_v27 }
 0x255   : > { %v4239_v36 = vadd.f32 %v5532_v43, %v4238_v18  ;;  %v4277_v13 = vmul.f32 %v5532_v43, %v5532_v43  ;;  %v4307_v17 = vadd.f32 %v4306_v50, %v4276_v63  ;;  %v5534_v34 = vadd.f32 %v3873_v57, %v2238_v42 }
 0x256   : > { %v4804_v6 = vpack.c.bf16 %v5533_v46, %v5531_v27  ;;  %v4280_v16 = vmul.f32 %v5533_v46, %v5533_v46 }
 0x257   : > { %v4308_v11 = vadd.f32 %v4307_v17, %v4277_v13  ;;  %v4799_v52 = vpack.c.bf16 %v5534_v34, %v5532_v43  ;;  %v4240_v54 = vadd.f32 %v5534_v34, %v4239_v36  ;;  %v4278_v38 = vmul.f32 %v5534_v34, %v5534_v34 }
 0x258   : > { %4844 = vst [vmem:[%s6889_s22 + $0x48] sm:$0xff] %v4804_v6   ;;  %v5297_v40 = vpop.f32.mrb[20].mxu1 }
 0x259   : > { %4843 = vst [vmem:[%s6889_s22 + $0x40] sm:$0xff] %v4799_v52   ;;  %v4241_v25 = vadd.f32 %v5531_v27, %v4240_v54  ;;  %v4309_v24 = vadd.f32 %v4308_v11, %v4278_v38  ;;  %v5489_v37 = vpop.f32.mrb[20].mxu0  ;;  %v2251_v39 = vpop.f32.mrb[21].mxu1 }
 0x25a   : > { %v5535_v26 = vadd.f32 %v5489_v37, %v5297_v40  ;;  %v3886_v45 = vpop.f32.mrb[21].mxu0  ;;  %v5298_v0 = vpop.f32.mrb[22].mxu1 }
 0x25b   : > { %v4310_v7 = vadd.f32 %v4309_v24, %v4279_v44  ;;  %v5536_v10 = vadd.f32 %v3886_v45, %v2251_v39  ;;  %v4242_v56 = vadd.f32 %v5533_v46, %v4241_v25  ;;  %v5490_v19 = vpop.f32.mrb[22].mxu0  ;;  %v2254_v14 = vpop.f32.mrb[23].mxu1 }
 0x25c   : > { %v5537_v22 = vadd.f32 %v5490_v19, %v5298_v0  ;;  %v3889_v48 = vpop.f32.mrb[23].mxu0  ;;  %v4283_v12 = vmul.f32 %v5535_v26, %v5535_v26 }
 0x25d   : > { %v4243_v28 = vadd.f32 %v5536_v10, %v4242_v56  ;;  %v4281_v8 = vmul.f32 %v5536_v10, %v5536_v10  ;;  %v4311_v20 = vadd.f32 %v4310_v7, %v4280_v16  ;;  %v5538_v35 = vadd.f32 %v3889_v48, %v2254_v14 }
 0x25e   : > { %v4814_v32 = vpack.c.bf16 %v5537_v22, %v5535_v26  ;;  %v4284_v53 = vmul.f32 %v5537_v22, %v5537_v22 }
 0x25f   : > { %v4312_v58 = vadd.f32 %v4311_v20, %v4281_v8  ;;  %v4809_v62 = vpack.c.bf16 %v5538_v35, %v5536_v10  ;;  %v4244_v1 = vadd.f32 %v5538_v35, %v4243_v28  ;;  %v4282_v23 = vmul.f32 %v5538_v35, %v5538_v35 }
 0x260   : > { %4846 = vst [vmem:[%s6889_s22 + $0x58] sm:$0xff] %v4814_v32   ;;  %v5301_v9 = vpop.f32.mrb[24].mxu1 }
 0x261   : > { %4845 = vst [vmem:[%s6889_s22 + $0x50] sm:$0xff] %v4809_v62   ;;  %v4245_v2 = vadd.f32 %v5535_v26, %v4244_v1  ;;  %v4313_v29 = vadd.f32 %v4312_v58, %v4282_v23  ;;  %v5493_v30 = vpop.f32.mrb[24].mxu0  ;;  %v2267_v47 = vpop.f32.mrb[25].mxu1 }
 0x262   : > { %v5539_v33 = vadd.f32 %v5493_v30, %v5301_v9  ;;  %v3902_v51 = vpop.f32.mrb[25].mxu0  ;;  %v5302_v41 = vpop.f32.mrb[26].mxu1 }
 0x263   : > { %v4314_v49 = vadd.f32 %v4313_v29, %v4283_v12  ;;  %v5540_v4 = vadd.f32 %v3902_v51, %v2267_v47  ;;  %v4246_v55 = vadd.f32 %v5537_v22, %v4245_v2  ;;  %v5494_v31 = vpop.f32.mrb[26].mxu0  ;;  %v2270_v60 = vpop.f32.mrb[27].mxu1 }
 0x264   : > { %v5541_v59 = vadd.f32 %v5494_v31, %v5302_v41  ;;  %v3905_v61 = vpop.f32.mrb[27].mxu0  ;;  %v4287_v46 = vmul.f32 %v5539_v33, %v5539_v33 }
 0x265   : > { %v4247_v3 = vadd.f32 %v5540_v4, %v4246_v55  ;;  %v4285_v27 = vmul.f32 %v5540_v4, %v5540_v4  ;;  %v4315_v5 = vadd.f32 %v4314_v49, %v4284_v53  ;;  %v5542_v15 = vadd.f32 %v3905_v61, %v2270_v60 }
 0x266   : > { %v4824_v63 = vpack.c.bf16 %v5541_v59, %v5539_v33  ;;  %v4288_v52 = vmul.f32 %v5541_v59, %v5541_v59 }
 0x267   : > { %v4316_v50 = vadd.f32 %v4315_v5, %v4285_v27  ;;  %v4819_v43 = vpack.c.bf16 %v5542_v15, %v5540_v4  ;;  %v4248_v18 = vadd.f32 %v5542_v15, %v4247_v3  ;;  %v4286_v21 = vmul.f32 %v5542_v15, %v5542_v15 }
 0x268   : > { %4848 = vst [vmem:[%s6889_s22 + $0x68] sm:$0xff] %v4824_v63   ;;  %v5305_v42 = vpop.f32.mrb[28].mxu1 }
 0x269   : > { %4847 = vst [vmem:[%s6889_s22 + $0x60] sm:$0xff] %v4819_v43   ;;  %v4249_v57 = vadd.f32 %v5539_v33, %v4248_v18  ;;  %v4317_v36 = vadd.f32 %v4316_v50, %v4286_v21  ;;  %v5497_v13 = vpop.f32.mrb[28].mxu0  ;;  %v2283_v17 = vpop.f32.mrb[29].mxu1 }
 0x26a   : > { %v5543_v34 = vadd.f32 %v5497_v13, %v5305_v42  ;;  %v3918_v6 = vpop.f32.mrb[29].mxu0  ;;  %v5306_v11 = vpop.f32.mrb[30].mxu1 }
 0x26b   : > { %v4318_v54 = vadd.f32 %v4317_v36, %v4287_v46  ;;  %v5544_v38 = vadd.f32 %v3918_v6, %v2283_v17  ;;  %v4250_v40 = vadd.f32 %v5541_v59, %v4249_v57  ;;  %v5498_v44 = vpop.f32.mrb[30].mxu0  ;;  %v2286_v25 = vpop.f32.mrb[31].mxu1 }
 0x26c   : > { %v5545_v24 = vadd.f32 %v5498_v44, %v5306_v11  ;;  %v3921_v37 = vpop.f32.mrb[31].mxu0  ;;  %v4291_v14 = vmul.f32 %v5543_v34, %v5543_v34 }
 0x26d   : > { %v4251_v39 = vadd.f32 %v5544_v38, %v4250_v40  ;;  %v4289_v26 = vmul.f32 %v5544_v38, %v5544_v38  ;;  %v4319_v45 = vadd.f32 %v4318_v54, %v4288_v52  ;;  %v5546_v0 = vadd.f32 %v3921_v37, %v2286_v25 }
 0x26e   : > { %v4834_v16 = vpack.c.bf16 %v5545_v24, %v5543_v34 }
 0x26f   : > { %v4320_v7 = vadd.f32 %v4319_v45, %v4289_v26  ;;  %v4829_v10 = vpack.c.bf16 %v5546_v0, %v5544_v38  ;;  %v4252_v56 = vadd.f32 %v5546_v0, %v4251_v39  ;;  %v4290_v19 = vmul.f32 %v5546_v0, %v5546_v0 }
 0x270   : > { %4850 = vst [vmem:[%s6889_s22 + $0x78] sm:$0xff] %v4834_v16  }
 0x271   : > { %4849 = vst [vmem:[%s6889_s22 + $0x70] sm:$0xff] %v4829_v10   ;;  %v4253_v22 = vadd.f32 %v5543_v34, %v4252_v56  ;;  %v4321_v48 = vadd.f32 %v4320_v7, %v4290_v19 }
 0x272   : > { %6030 = shalt.err (!%p6027_p5)
}
 0x273   : > { %s6031_s4 = scalar_lea.hbm %s6914_s8, 2048  ;;  %s6035_s9 = scalar_lea.hbm %s7000_s2, 4096 }
 0x274   : > { %p6032_p9 = scmp.ne.s32.totalorder %s6914_s8, %s6031_s4  ;;  %p6036_p3 = scmp.lt.u32.totalorder %s6914_s8, %s7000_s2 }
 0x275   : > { %p6037_p7 = scmp.lt.u32.totalorder %s6035_s9, %s6031_s4  ;;  %p6039_p4 = scmp.lt.u32.totalorder %s6031_s4, %s6914_s8 }
 0x276   : > { %p6033_p1 = pnand %p6032_p9, %p6260_p10 }
 0x277   : > { %p6038_p11 = por %p6037_p7, %p6036_p3 }
 0x278   : > { %p6034_p2 = pneg %p6033_p1 }
 0x279   : > { %p6040_p6 = por %p6039_p4, %p6038_p11 }
 0x27b   : > { %p6041_p8 = pnand %p6040_p6, %p6034_p2 }
 0x27d   : > { %6044 = shalt.err (!%p6041_p8)
}
 0x27e   : > { %s6142_s24 = smov 64   ;;  %s6143_s11 = smov 4   ;;  %v4292_v28 = vmul.f32 %v5545_v24, %v5545_v24  ;;  %v4254_v8 = vadd.f32 %v5545_v24, %v4253_v22  ;;  %v4322_v20 = vadd.f32 %v4321_v48, %v4291_v14  ;;  %vm4330_vm6 = vcmask 1040384  }
 0x27f   : > { %5780 = dma.vmem_to_hbm [thread:$0]  (%p6260_p10), %s6916_s10, 2048, %s6914_s8, %s4334_s18, %s6142_s24, %s6142_s24, %s6143_s11  }
 0x280   : > { %v4255_v35 = vrot.slane %v4254_v8, 4  ;;  %v4323_v32 = vadd.f32 %v4322_v20, %v4292_v28  ;;  %s4511_s7 = sshll.u32 %s6317_s25, 1  ;;  %s4720_s19 = sshll.u32 %s6127_s15, 5 }
 0x281   : > { %s251_s10 = scalar_lea.vmem [#allocation9], %s4511_s7  ;;  %s6949_s21 = scalar_lea.hbm %s7001_s3, %s4720_s19 }
 0x282   : > { %v4256_v58 = vadd.f32 %v4255_v35, %v4254_v8  ;;  %v4324_v62 = vrot.slane %v4323_v32, 4  ;;  %s4370_s8 = sshll.u32 %s251_s10, 4  ;;  %s4339_s27 = scalar_lea.sflag [#allocation10], %s6317_s25  ;;  %s6951_s8 = int_to_ptr.vmem [resolvable:$true] %s4370_s8 }
 0x283   : > { %s6045_s4 = scalar_lea.vmem %s6951_s8, 32  ;;  %s6144_s15 = smov [#allocation9]  }
 0x284   : > { %v4257_v1 = vrot.slane %v4256_v58, 2  ;;  %v4325_v23 = vadd.f32 %v4324_v62, %v4323_v32  ;;  %p6046_p12 = scmp.ne.s32.totalorder %s6951_s8, %s6045_s4  ;;  %s6049_s26 = sshll.u32 %s6144_s15, 4  ;;  %s6050_s26 = int_to_ptr.vmem [resolvable:$false] %s6049_s26 }
 0x285   : > { %s6051_s6 = scalar_lea.vmem %s6050_s26, 64  ;;  %p6052_p5 = scmp.lt.s32.totalorder %s6951_s8, %s6050_s26 }
 0x286   : > { %v4258_v9 = vadd.f32 %v4257_v1, %v4256_v58  ;;  %v4326_v12 = vrot.slane %v4325_v23, 2  ;;  %p6047_p13 = pnand %p6046_p12, %p6260_p10  ;;  %p6053_p9 = scmp.lt.s32.totalorder %s6051_s6, %s6045_s4 }
 0x288   : > { %v4259_v2 = vrot.slane %v4258_v9, 1  ;;  %v4327_v29 = vadd.f32 %v4326_v12, %v4325_v23  ;;  %p6048_p0 = pneg %p6047_p13  ;;  %p6054_p1 = por %p6053_p9, %p6052_p5 }
 0x28a   : > { %v4328_v30 = vrot.slane %v4327_v29, 1  ;;  %v4260_v47 = vadd.f32 %v4259_v2, %v4258_v9  ;;  %p6055_p2 = pnand %p6054_p1, %p6048_p0 }
 0x28c   : > { %v4329_v33 = vadd.f32 %v4328_v30, %v4327_v29 }
 0x28e   : > { %v4331_v51 = vsel %vm4330_vm6, %v4260_v47, %v4329_v33 }
 0x28f   : > { %4332 = vst [vmem:[%s251_s10] sm:$0x3] %v4331_v51 }
 0x290   : > { %6058 = shalt.err (!%p6055_p2)
}
 0x291   : > { %s6059_s25 = scalar_lea.hbm %s6949_s21, 32  ;;  %s6063_s22 = scalar_lea.hbm %s7001_s3, 64 }
 0x292   : > { %p6060_p3 = scmp.ne.s32.totalorder %s6949_s21, %s6059_s25  ;;  %p6064_p4 = scmp.lt.u32.totalorder %s6949_s21, %s7001_s3 }
 0x293   : > { %p6065_p6 = scmp.lt.u32.totalorder %s6063_s22, %s6059_s25  ;;  %p6067_p12 = scmp.lt.u32.totalorder %s6059_s25, %s6949_s21 }
 0x294   : > { %p6061_p7 = pnand %p6060_p3, %p6260_p10 }
 0x295   : > { %p6066_p8 = por %p6065_p6, %p6064_p4 }
 0x296   : > { %p6062_p11 = pneg %p6061_p7 }
 0x297   : > { %p6068_p13 = por %p6067_p12, %p6066_p8 }
 0x299   : > { %p6069_p0 = pnand %p6068_p13, %p6062_p11 }
 0x29b   : > { %6072 = shalt.err (!%p6069_p0)
}
 0x29c   : > { %5781 = dma.vmem_to_hbm [thread:$0]  (%p6260_p10), %s6951_s8, 32, %s6949_s21, %s4339_s27  }
 0x29d PF: > { %s4382_s7 = sand.u32 1, %s6115_s12   ;;  %p7022_p5 = scmp.ne.s32.totalorder %s7009_s23, 0 }
 0x29e   : > { %p7023_p9 = scmp.ge.s32.totalorder %s6135_s17, 2  ;;  %s4383_s19 = scalar_lea.sflag [#allocation5], %s4382_s7 }
 0x2a0   : > { %p5793_p1 = pnand %p7023_p9, %p7022_p5 }
 0x2a2   : > { %6106 = dma.done.wait (!%p5793_p1), %s4383_s19, 2048  }
 0x2a3   : > { %6108 = vsyncadd (!%p5793_p1), %s4383_s19, 4294965248  ;;  %s4392_s10 = scalar_lea.sflag [#allocation10], %s4382_s7 }
 0x2a4   : > { %6110 = dma.done.wait (!%p5793_p1), %s4392_s10, 32  }
 0x2a5   : > { %6112 = vsyncadd (!%p5793_p1), %s4392_s10, 4294967264  ;;  %s24_s17 = sadd.s32 1, %s6135_s17   ;;  %s7024_s12 = smov %s6119_s13 }
 0x2a6   : > { %p21_p2 = scmp.ge.s32.totalorder %s24_s17, 4   ;;  %s7025_s13 = smov %s6123_s14 }
 0x2a7   : > { %s7026_s14 = smov %s6269_s5  ;;  %s7027_s15 = smov %s6131_s16 }
 0x2a8   : > { %s7028_s16 = smov %s7030_s28  ;;  %23 = sbr.rel (!%p21_p2) target bundleno = 9 (0x9), region = 107 }
 0x2af   :  { %4397 = vsyncpa [#allocation4], 1 }
 0x2b0   :  { %4399 = vsyncpa [#allocation4 + $0x1], 1 }
 0x2b1   :  { %4400 = vsyncpa [#allocation7], 1 }
 0x2b2   :  { %4401 = vsyncpa [#allocation5], 1 }
 0x2b3   :  { %4403 = vsyncpa [#allocation5 + $0x1], 1 }
 0x2b4   :  { %4404 = vsyncpa [#allocation10], 1 }
 0x2b5   :  { %4406 = vsyncpa [#allocation10 + $0x1], 1 }

</bundles_post_ra>
